<compile_context>
chip_gen: v7x
topology: tpu7x:2x2x1
jax: 0.10.0
libtpu: 0.0.40
codegen_flags: <defaults>
</compile_context>

<pallas_src>
import functools

import jax
import jax.numpy as jnp
from jax import lax
from jax.experimental import pallas as pl
from jax.experimental.pallas import tpu as pltpu


def _round_up(x, m):
    return ((x + m - 1) // m) * m


def _pad_last(x, target):
    pad = target - x.shape[-1]
    if pad == 0:
        return x
    cfg = [(0, 0)] * (x.ndim - 1) + [(0, pad)]
    return jnp.pad(x, cfg)


# -----------------------------------------------------------------------------
# Pallas kernel: GRU recurrence + decoder head
# -----------------------------------------------------------------------------
def decoder_kernel(
    emb_ref,      # (T*B, E)    bf16, row = t*B + b (sos prepended, time-major flat)
    mask_ref,     # (T*B, 1)    f32, 1.0 where t < lens[b] else 0.0
    cnn_ref,      # (T*B, C)    bf16, cnn features repeated per timestep
    w_ir_ref, w_iz_ref, w_in_ref,   # (E, H) bf16  per-gate input weights (transposed)
    w_hr_ref, w_hz_ref, w_hn_ref,   # (H, H) bf16  per-gate hidden weights (transposed)
    b_r_ref, b_z_ref,               # (1, H) f32   b_ih + b_hh folded (r, z gates)
    b_in_ref, b_hn_ref,             # (1, H) f32   n-gate biases (kept separate)
    wc_ref, bc_ref,                 # (C, TOTp) bf16 / (1, TOTp) f32
    wg_ref, bg_ref,                 # (H, TOTp) bf16 / (1, TOTp) f32
    wcls_ref, bcls_ref,             # (TOTp, NCp) bf16 / (1, NCp) f32
    out_ref,                        # (T*B, NCp) f32   lane-dense output slab
    hs_ref,                         # scratch (T*B, H) f32
    *, batch, t_out):
    B = batch
    f32 = jnp.float32

    emb = emb_ref[...]                                            # (T*B, E) bf16

    # --- hoisted input projection: one batched matmul per gate (M = T*B) ----
    gi_r = jnp.dot(emb, w_ir_ref[...], preferred_element_type=f32) + b_r_ref[...]
    gi_z = jnp.dot(emb, w_iz_ref[...], preferred_element_type=f32) + b_z_ref[...]
    gi_n = jnp.dot(emb, w_in_ref[...], preferred_element_type=f32) + b_in_ref[...]

    w_hr = w_hr_ref[...]
    w_hz = w_hz_ref[...]
    w_hn = w_hn_ref[...]
    b_hn = b_hn_ref[...]

    H = w_hr.shape[0]
    h = jnp.zeros((B, H), f32)

    # --- GRU recurrence: fully unrolled, only h @ W_h* + gate math in-loop ---
    # (t_out is a small static Python int; a Python loop == complete unroll,
    #  all row slices are static.  For large T use lax.fori_loop(..., unroll=k)
    #  with pl.ds offsets instead.)
    for t in range(t_out):
        r0, r1 = t * B, (t + 1) * B
        hb = h.astype(jnp.bfloat16)
        gh_r = jnp.dot(hb, w_hr, preferred_element_type=f32)
        gh_z = jnp.dot(hb, w_hz, preferred_element_type=f32)
        gh_n = jnp.dot(hb, w_hn, preferred_element_type=f32) + b_hn
        # gate math kept in f32 (v5e VPU/EUP have no bf16)
        r = jax.nn.sigmoid(gi_r[r0:r1] + gh_r)
        z = jax.nn.sigmoid(gi_z[r0:r1] + gh_z)
        n = jnp.tanh(gi_n[r0:r1] + r * gh_n)
        h = (1.0 - z) * n + z * h
        hs_ref[r0:r1, :] = h

    # --- decoder head, batched over all T*B rows (out of the serial loop) ----
    # pack/unpack semantics: unpacked GRU output is zero for t >= lens[b].
    hs = hs_ref[...] * mask_ref[...]                              # (T*B, H) f32

    cnn_lin = jnp.dot(cnn_ref[...], wc_ref[...],
                      preferred_element_type=f32) + bc_ref[...]   # (T*B, TOTp)
    gru_lin = jnp.dot(hs.astype(jnp.bfloat16), wg_ref[...],
                      preferred_element_type=f32) + bg_ref[...]   # (T*B, TOTp)
    combined = jnp.maximum(cnn_lin + gru_lin, 0.0)                # relu
    out_ref[...] = jnp.dot(combined.astype(jnp.bfloat16), wcls_ref[...],
                           preferred_element_type=f32) + bcls_ref[...]


# -----------------------------------------------------------------------------
# Wrapper (plain-JAX glue + pallas_call)
# -----------------------------------------------------------------------------
def decoder_forward(cnn_feat, labels, lens, params):
    """cnn_feat: (B, C, 1, 1) f32 NCHW.  labels: (B, L) int32.  lens: python list."""
    B, L = labels.shape
    E = params["embed_w"].shape[1]
    H = params["w_hh"].shape[1]
    C = params["wc"].shape[1]
    TOT = params["wc"].shape[0]
    NC = params["wcls"].shape[0]

    t_out = int(max(lens))
    assert t_out <= L + 1, (t_out, L + 1)
    lens_arr = jnp.asarray(lens, jnp.int32)

    LANE = 128
    TOTp = _round_up(TOT, LANE)
    NCp = _round_up(NC, LANE)
    bf16, f32 = jnp.bfloat16, jnp.float32

    # Embedding lookup + prepend sos token (glue), flatten time-major: row = t*B + b.
    emb = params["embed_w"][labels]                                   # (B, L, E)
    sos = jnp.broadcast_to(params["sos"], (B, 1, E))
    emb_full = jnp.concatenate([sos, emb], axis=1)[:, :t_out]         # (B, T, E)
    emb2d = jnp.transpose(emb_full, (1, 0, 2)).reshape(t_out * B, E).astype(bf16)

    # pack/unpack validity mask, same row order.
    valid = jnp.arange(t_out, dtype=jnp.int32)[:, None] < lens_arr[None, :]   # (T, B)
    mask2d = valid.reshape(t_out * B, 1).astype(f32)

    # CNN features repeated per timestep (so the kernel needs no in-kernel tile).
    cnn2d = cnn_feat.reshape(B, C).astype(f32)
    cnn_tiled = jnp.tile(cnn2d, (t_out, 1)).astype(bf16)              # (T*B, C)

    # GRU weights split per gate (lane-aligned slices), transposed, bf16 operands.
    w_ih, w_hh = params["w_ih"], params["w_hh"]
    b_ih, b_hh = params["b_ih"], params["b_hh"]
    w_ir = w_ih[0 * H:1 * H].T.astype(bf16)            # (E, H)
    w_iz = w_ih[1 * H:2 * H].T.astype(bf16)
    w_in = w_ih[2 * H:3 * H].T.astype(bf16)
    w_hr = w_hh[0 * H:1 * H].T.astype(bf16)            # (H, H)
    w_hz = w_hh[1 * H:2 * H].T.astype(bf16)
    w_hn = w_hh[2 * H:3 * H].T.astype(bf16)
    b_r = (b_ih[0 * H:1 * H] + b_hh[0 * H:1 * H]).reshape(1, H).astype(f32)
    b_z = (b_ih[1 * H:2 * H] + b_hh[1 * H:2 * H]).reshape(1, H).astype(f32)
    b_in = b_ih[2 * H:3 * H].reshape(1, H).astype(f32)
    b_hn = b_hh[2 * H:3 * H].reshape(1, H).astype(f32)

    # Head weights: transpose + zero-pad lane dims to multiples of 128.
    wc_p = _pad_last(params["wc"].T, TOTp).astype(bf16)                      # (C, TOTp)
    bc_p = _pad_last(params["bc"].reshape(1, TOT), TOTp).astype(f32)
    wg_p = _pad_last(params["wg"].T, TOTp).astype(bf16)                      # (H, TOTp)
    bg_p = _pad_last(params["bg"].reshape(1, TOT), TOTp).astype(f32)
    wcls_p = _pad_last(jnp.pad(params["wcls"].T, ((0, TOTp - TOT), (0, 0))),
                       NCp).astype(bf16)                                     # (TOTp, NCp)
    bcls_p = _pad_last(params["bcls"].reshape(1, NC), NCp).astype(f32)

    vmem = pl.BlockSpec(memory_space=pltpu.MemorySpace.VMEM)
    kernel = functools.partial(decoder_kernel, batch=B, t_out=t_out)

    # At these sizes the whole problem fits in VMEM with a single invocation.
    # For large B add a grid over batch blocks (dimension_semantics=("parallel",))
    # to use v7x's second TensorCore; for large T/E block the time axis with a
    # BlockSpec grid (emb in HBM) and keep h in persistent scratch.
    out2d = pl.pallas_call(
        kernel,
        out_shape=jax.ShapeDtypeStruct((t_out * B, NCp), f32),
        in_specs=[vmem] * 19,
        out_specs=vmem,
        scratch_shapes=[pltpu.VMEM((t_out * B, H), f32)],
    )(emb2d, mask2d, cnn_tiled,
      w_ir, w_iz, w_in, w_hr, w_hz, w_hn,
      b_r, b_z, b_in, b_hn,
      wc_p, bc_p, wg_p, bg_p, wcls_p, bcls_p)

    out = out2d[:, :NC].reshape(t_out, B, NC)          # drop NC padding
    return jnp.transpose(out, (1, 0, 2))               # (B, T_out, NC) batch-first


# -----------------------------------------------------------------------------
# Pure-JAX reference (same math, f32, no Pallas) for a sanity check
# -----------------------------------------------------------------------------
def decoder_reference(cnn_feat, labels, lens, params):
    B, L = labels.shape
    E = params["embed_w"].shape[1]
    H = params["w_hh"].shape[1]

    emb = params["embed_w"][labels]
    sos = jnp.broadcast_to(params["sos"], (B, 1, E))
    x = jnp.concatenate([sos, emb], axis=1)                          # (B, L+1, E)
    t_out = int(max(lens))
    xs = jnp.transpose(x[:, :t_out], (1, 0, 2))                      # (T, B, E)

    def cell(h, x_t):
        gi = x_t @ params["w_ih"].T + params["b_ih"]
        gh = h @ params["w_hh"].T + params["b_hh"]
        r = jax.nn.sigmoid(gi[:, :H] + gh[:, :H])
        z = jax.nn.sigmoid(gi[:, H:2 * H] + gh[:, H:2 * H])
        n = jnp.tanh(gi[:, 2 * H:] + r * gh[:, 2 * H:])
        h_new = (1.0 - z) * n + z * h
        return h_new, h_new

    _, hs = lax.scan(cell, jnp.zeros((B, H), jnp.float32), xs)
    hs = jnp.transpose(hs, (1, 0, 2))                                # (B, T, H)
    mask = jnp.arange(t_out)[None, :] < jnp.asarray(lens)[:, None]
    hs = jnp.where(mask[:, :, None], hs, 0.0)                        # unpack zero-padding

    cnn = cnn_feat.reshape(B, -1)
    cnn_lin = cnn @ params["wc"].T + params["bc"]                    # (B, TOT)
    gru_lin = hs @ params["wg"].T + params["bg"]                     # (B, T, TOT)
    combined = jax.nn.relu(cnn_lin[:, None, :] + gru_lin)
    return combined @ params["wcls"].T + params["bcls"]              # (B, T, NC)


# -----------------------------------------------------------------------------
# Deterministic parameter init (shapes from DecoderRNN.__init__)
# -----------------------------------------------------------------------------
def init_params(key, embed_size, hidden_size, cnn_size, n_classes, total_size):
    ks = jax.random.split(key, 12)
    bound_sos = (6.0 / (1 + embed_size)) ** 0.5                      # xavier_uniform
    return {
        "sos":     jax.random.uniform(ks[0], (1, 1, embed_size), jnp.float32,
                                      -bound_sos, bound_sos),
        "embed_w": jax.random.normal(ks[1], (n_classes, embed_size), jnp.float32) * 0.1,
        "w_ih":    jax.random.normal(ks[2], (3 * hidden_size, embed_size), jnp.float32) * 0.1,
        "w_hh":    jax.random.normal(ks[3], (3 * hidden_size, hidden_size), jnp.float32) * 0.1,
        "b_ih":    jax.random.normal(ks[4], (3 * hidden_size,), jnp.float32) * 0.1,
        "b_hh":    jax.random.normal(ks[5], (3 * hidden_size,), jnp.float32) * 0.1,
        "wc":      jax.random.normal(ks[6], (total_size, cnn_size), jnp.float32) * 0.1,
        "bc":      jax.random.normal(ks[7], (total_size,), jnp.float32) * 0.1,
        "wg":      jax.random.normal(ks[8], (total_size, hidden_size), jnp.float32) * 0.1,
        "bg":      jax.random.normal(ks[9], (total_size,), jnp.float32) * 0.1,
        "wcls":    jax.random.normal(ks[10], (n_classes, total_size), jnp.float32) * 0.1,
        "bcls":    jax.random.normal(ks[11], (n_classes,), jnp.float32) * 0.1,
    }


if __name__ == "__main__":
    # Small shapes consistent with the module.
    B = 2
    L = 7                    # label sequence length (before sos)
    EMBED = 32
    HIDDEN = 32
    CNN_SIZE = 64
    N_CLASSES = 16
    TOTAL = 48
    lens = [8, 6]            # pack_padded_sequence lengths (sorted desc), max == L+1

    key = jax.random.PRNGKey(0)
    k_param, k_cnn, k_lab = jax.random.split(key, 3)

    params = init_params(k_param, EMBED, HIDDEN, CNN_SIZE, N_CLASSES, TOTAL)
    cnn_feat = jax.random.normal(k_cnn, (B, CNN_SIZE, 1, 1), jnp.float32)   # NCHW
    labels = jax.random.randint(k_lab, (B, L), 0, N_CLASSES, jnp.int32)

    out = jax.block_until_ready(decoder_forward(cnn_feat, labels, lens, params))
    ref = jax.block_until_ready(decoder_reference(cnn_feat, labels, lens, params))

    assert out.shape == (B, max(lens), N_CLASSES), out.shape
    max_err = float(jnp.max(jnp.abs(out - ref)))
    # bf16 MXU operands with f32 accumulation vs f32 reference -> loosened tol.
    assert jnp.allclose(out, ref, atol=2e-2, rtol=2e-2), max_err

    print("KERNEL_OK")
</pallas_src>

<mosaic_0001>
module attributes {stable_mosaic.version = 11 : i64} {
  func.func @decoder_kernel(%arg0: memref<16x32xbf16, #tpu.memory_space<vmem>>, %arg1: memref<16x1xf32, #tpu.memory_space<vmem>>, %arg2: memref<16x64xbf16, #tpu.memory_space<vmem>>, %arg3: memref<32x32xbf16, #tpu.memory_space<vmem>>, %arg4: memref<32x32xbf16, #tpu.memory_space<vmem>>, %arg5: memref<32x32xbf16, #tpu.memory_space<vmem>>, %arg6: memref<32x32xbf16, #tpu.memory_space<vmem>>, %arg7: memref<32x32xbf16, #tpu.memory_space<vmem>>, %arg8: memref<32x32xbf16, #tpu.memory_space<vmem>>, %arg9: memref<1x32xf32, #tpu.memory_space<vmem>>, %arg10: memref<1x32xf32, #tpu.memory_space<vmem>>, %arg11: memref<1x32xf32, #tpu.memory_space<vmem>>, %arg12: memref<1x32xf32, #tpu.memory_space<vmem>>, %arg13: memref<64x128xbf16, #tpu.memory_space<vmem>>, %arg14: memref<1x128xf32, #tpu.memory_space<vmem>>, %arg15: memref<32x128xbf16, #tpu.memory_space<vmem>>, %arg16: memref<1x128xf32, #tpu.memory_space<vmem>>, %arg17: memref<128x128xbf16, #tpu.memory_space<vmem>>, %arg18: memref<1x128xf32, #tpu.memory_space<vmem>>, %arg19: memref<16x128xf32, #tpu.memory_space<vmem>>, %arg20: memref<16x32xf32, #tpu.memory_space<vmem>>) attributes {dimension_semantics = [], scalar_prefetch = 0 : i64, scratch_operands = 1 : i64, tpu.core_type = #tpu.core_type<tc>} {
    %c0 = arith.constant 0 : index
    %c0_0 = arith.constant 0 : index
    %0 = vector.load %arg0[%c0, %c0_0] : memref<16x32xbf16, #tpu.memory_space<vmem>>, vector<16x32xbf16>
    %c0_1 = arith.constant 0 : index
    %c0_2 = arith.constant 0 : index
    %1 = vector.load %arg3[%c0_1, %c0_2] : memref<32x32xbf16, #tpu.memory_space<vmem>>, vector<32x32xbf16>
    %cst = arith.constant dense<0.000000e+00> : vector<16x32xf32>
    %2 = tpu.matmul %0, %1, %cst {dimension_numbers = #tpu.dot_dimension_numbers<[1], [0], [0], [1], [0, 0, 1, 1], [], []>} : vector<16x32xbf16>, vector<32x32xbf16>, vector<16x32xf32> -> vector<16x32xf32>
    %c0_3 = arith.constant 0 : index
    %c0_4 = arith.constant 0 : index
    %3 = vector.load %arg9[%c0_3, %c0_4] : memref<1x32xf32, #tpu.memory_space<vmem>>, vector<1x32xf32>
    %4 = vector.broadcast %3 : vector<1x32xf32> to vector<16x32xf32>
    %5 = arith.addf %2, %4 : vector<16x32xf32>
    %c0_5 = arith.constant 0 : index
    %c0_6 = arith.constant 0 : index
    %6 = vector.load %arg4[%c0_5, %c0_6] : memref<32x32xbf16, #tpu.memory_space<vmem>>, vector<32x32xbf16>
    %cst_7 = arith.constant dense<0.000000e+00> : vector<16x32xf32>
    %7 = tpu.matmul %0, %6, %cst_7 {dimension_numbers = #tpu.dot_dimension_numbers<[1], [0], [0], [1], [0, 0, 1, 1], [], []>} : vector<16x32xbf16>, vector<32x32xbf16>, vector<16x32xf32> -> vector<16x32xf32>
    %c0_8 = arith.constant 0 : index
    %c0_9 = arith.constant 0 : index
    %8 = vector.load %arg10[%c0_8, %c0_9] : memref<1x32xf32, #tpu.memory_space<vmem>>, vector<1x32xf32>
    %9 = vector.broadcast %8 : vector<1x32xf32> to vector<16x32xf32>
    %10 = arith.addf %7, %9 : vector<16x32xf32>
    %c0_10 = arith.constant 0 : index
    %c0_11 = arith.constant 0 : index
    %11 = vector.load %arg5[%c0_10, %c0_11] : memref<32x32xbf16, #tpu.memory_space<vmem>>, vector<32x32xbf16>
    %cst_12 = arith.constant dense<0.000000e+00> : vector<16x32xf32>
    %12 = tpu.matmul %0, %11, %cst_12 {dimension_numbers = #tpu.dot_dimension_numbers<[1], [0], [0], [1], [0, 0, 1, 1], [], []>} : vector<16x32xbf16>, vector<32x32xbf16>, vector<16x32xf32> -> vector<16x32xf32>
    %c0_13 = arith.constant 0 : index
    %c0_14 = arith.constant 0 : index
    %13 = vector.load %arg11[%c0_13, %c0_14] : memref<1x32xf32, #tpu.memory_space<vmem>>, vector<1x32xf32>
    %14 = vector.broadcast %13 : vector<1x32xf32> to vector<16x32xf32>
    %15 = arith.addf %12, %14 : vector<16x32xf32>
    %c0_15 = arith.constant 0 : index
    %c0_16 = arith.constant 0 : index
    %16 = vector.load %arg6[%c0_15, %c0_16] : memref<32x32xbf16, #tpu.memory_space<vmem>>, vector<32x32xbf16>
    %c0_17 = arith.constant 0 : index
    %c0_18 = arith.constant 0 : index
    %17 = vector.load %arg7[%c0_17, %c0_18] : memref<32x32xbf16, #tpu.memory_space<vmem>>, vector<32x32xbf16>
    %c0_19 = arith.constant 0 : index
    %c0_20 = arith.constant 0 : index
    %18 = vector.load %arg8[%c0_19, %c0_20] : memref<32x32xbf16, #tpu.memory_space<vmem>>, vector<32x32xbf16>
    %c0_21 = arith.constant 0 : index
    %c0_22 = arith.constant 0 : index
    %19 = vector.load %arg12[%c0_21, %c0_22] : memref<1x32xf32, #tpu.memory_space<vmem>>, vector<1x32xf32>
    %cst_23 = arith.constant 0.000000e+00 : f32
    %20 = vector.broadcast %cst_23 : f32 to vector<2x32xf32>
    %21 = arith.truncf %20 : vector<2x32xf32> to vector<2x32xbf16>
    %cst_24 = arith.constant dense<0.000000e+00> : vector<2x32xf32>
    %22 = tpu.matmul %21, %16, %cst_24 {dimension_numbers = #tpu.dot_dimension_numbers<[1], [0], [0], [1], [0, 0, 1, 1], [], []>} : vector<2x32xbf16>, vector<32x32xbf16>, vector<2x32xf32> -> vector<2x32xf32>
    %cst_25 = arith.constant dense<0.000000e+00> : vector<2x32xf32>
    %23 = tpu.matmul %21, %17, %cst_25 {dimension_numbers = #tpu.dot_dimension_numbers<[1], [0], [0], [1], [0, 0, 1, 1], [], []>} : vector<2x32xbf16>, vector<32x32xbf16>, vector<2x32xf32> -> vector<2x32xf32>
    %cst_26 = arith.constant dense<0.000000e+00> : vector<2x32xf32>
    %24 = tpu.matmul %21, %18, %cst_26 {dimension_numbers = #tpu.dot_dimension_numbers<[1], [0], [0], [1], [0, 0, 1, 1], [], []>} : vector<2x32xbf16>, vector<32x32xbf16>, vector<2x32xf32> -> vector<2x32xf32>
    %25 = vector.broadcast %19 : vector<1x32xf32> to vector<2x32xf32>
    %26 = arith.addf %24, %25 : vector<2x32xf32>
    %27 = vector.extract_strided_slice %5 {offsets = [0, 0], sizes = [2, 32], strides = [1, 1]} : vector<16x32xf32> to vector<2x32xf32>
    %28 = arith.addf %27, %22 : vector<2x32xf32>
    %29 = arith.negf %28 : vector<2x32xf32>
    %30 = math.exp %29 : vector<2x32xf32>
    %cst_27 = arith.constant 1.000000e+00 : f32
    %31 = vector.broadcast %cst_27 : f32 to vector<2x32xf32>
    %32 = arith.addf %31, %30 : vector<2x32xf32>
    %33 = arith.divf %31, %32 : vector<2x32xf32>
    %34 = vector.extract_strided_slice %10 {offsets = [0, 0], sizes = [2, 32], strides = [1, 1]} : vector<16x32xf32> to vector<2x32xf32>
    %35 = arith.addf %34, %23 : vector<2x32xf32>
    %36 = arith.negf %35 : vector<2x32xf32>
    %37 = math.exp %36 : vector<2x32xf32>
    %cst_28 = arith.constant 1.000000e+00 : f32
    %38 = vector.broadcast %cst_28 : f32 to vector<2x32xf32>
    %39 = arith.addf %38, %37 : vector<2x32xf32>
    %40 = arith.divf %38, %39 : vector<2x32xf32>
    %41 = vector.extract_strided_slice %15 {offsets = [0, 0], sizes = [2, 32], strides = [1, 1]} : vector<16x32xf32> to vector<2x32xf32>
    %42 = arith.mulf %33, %26 : vector<2x32xf32>
    %43 = arith.addf %41, %42 : vector<2x32xf32>
    %44 = math.tanh %43 : vector<2x32xf32>
    %cst_29 = arith.constant 1.000000e+00 : f32
    %45 = vector.broadcast %cst_29 : f32 to vector<2x32xf32>
    %46 = arith.subf %45, %40 : vector<2x32xf32>
    %47 = arith.mulf %46, %44 : vector<2x32xf32>
    %48 = arith.mulf %40, %20 : vector<2x32xf32>
    %49 = arith.addf %47, %48 : vector<2x32xf32>
    %c0_30 = arith.constant 0 : index
    %c0_31 = arith.constant 0 : index
    %50 = vector.load %arg20[%c0_30, %c0_31] : memref<16x32xf32, #tpu.memory_space<vmem>>, vector<2x32xf32>
    tpu.vector_store %arg20[%c0_30, %c0_31], %49 {strides = array<i32>} : memref<16x32xf32, #tpu.memory_space<vmem>>, vector<2x32xf32>,
    %51 = arith.truncf %49 : vector<2x32xf32> to vector<2x32xbf16>
    %cst_32 = arith.constant dense<0.000000e+00> : vector<2x32xf32>
    %52 = tpu.matmul %51, %16, %cst_32 {dimension_numbers = #tpu.dot_dimension_numbers<[1], [0], [0], [1], [0, 0, 1, 1], [], []>} : vector<2x32xbf16>, vector<32x32xbf16>, vector<2x32xf32> -> vector<2x32xf32>
    %cst_33 = arith.constant dense<0.000000e+00> : vector<2x32xf32>
    %53 = tpu.matmul %51, %17, %cst_33 {dimension_numbers = #tpu.dot_dimension_numbers<[1], [0], [0], [1], [0, 0, 1, 1], [], []>} : vector<2x32xbf16>, vector<32x32xbf16>, vector<2x32xf32> -> vector<2x32xf32>
    %cst_34 = arith.constant dense<0.000000e+00> : vector<2x32xf32>
    %54 = tpu.matmul %51, %18, %cst_34 {dimension_numbers = #tpu.dot_dimension_numbers<[1], [0], [0], [1], [0, 0, 1, 1], [], []>} : vector<2x32xbf16>, vector<32x32xbf16>, vector<2x32xf32> -> vector<2x32xf32>
    %55 = vector.broadcast %19 : vector<1x32xf32> to vector<2x32xf32>
    %56 = arith.addf %54, %55 : vector<2x32xf32>
    %57 = vector.extract_strided_slice %5 {offsets = [2, 0], sizes = [2, 32], strides = [1, 1]} : vector<16x32xf32> to vector<2x32xf32>
    %58 = arith.addf %57, %52 : vector<2x32xf32>
    %59 = arith.negf %58 : vector<2x32xf32>
    %60 = math.exp %59 : vector<2x32xf32>
    %cst_35 = arith.constant 1.000000e+00 : f32
    %61 = vector.broadcast %cst_35 : f32 to vector<2x32xf32>
    %62 = arith.addf %61, %60 : vector<2x32xf32>
    %63 = arith.divf %61, %62 : vector<2x32xf32>
    %64 = vector.extract_strided_slice %10 {offsets = [2, 0], sizes = [2, 32], strides = [1, 1]} : vector<16x32xf32> to vector<2x32xf32>
    %65 = arith.addf %64, %53 : vector<2x32xf32>
    %66 = arith.negf %65 : vector<2x32xf32>
    %67 = math.exp %66 : vector<2x32xf32>
    %cst_36 = arith.constant 1.000000e+00 : f32
    %68 = vector.broadcast %cst_36 : f32 to vector<2x32xf32>
    %69 = arith.addf %68, %67 : vector<2x32xf32>
    %70 = arith.divf %68, %69 : vector<2x32xf32>
    %71 = vector.extract_strided_slice %15 {offsets = [2, 0], sizes = [2, 32], strides = [1, 1]} : vector<16x32xf32> to vector<2x32xf32>
    %72 = arith.mulf %63, %56 : vector<2x32xf32>
    %73 = arith.addf %71, %72 : vector<2x32xf32>
    %74 = math.tanh %73 : vector<2x32xf32>
    %cst_37 = arith.constant 1.000000e+00 : f32
    %75 = vector.broadcast %cst_37 : f32 to vector<2x32xf32>
    %76 = arith.subf %75, %70 : vector<2x32xf32>
    %77 = arith.mulf %76, %74 : vector<2x32xf32>
    %78 = arith.mulf %70, %49 : vector<2x32xf32>
    %79 = arith.addf %77, %78 : vector<2x32xf32>
    %c2 = arith.constant 2 : index
    %c0_38 = arith.constant 0 : index
    %80 = vector.load %arg20[%c2, %c0_38] : memref<16x32xf32, #tpu.memory_space<vmem>>, vector<2x32xf32>
    tpu.vector_store %arg20[%c2, %c0_38], %79 {strides = array<i32>} : memref<16x32xf32, #tpu.memory_space<vmem>>, vector<2x32xf32>,
    %81 = arith.truncf %79 : vector<2x32xf32> to vector<2x32xbf16>
    %cst_39 = arith.constant dense<0.000000e+00> : vector<2x32xf32>
    %82 = tpu.matmul %81, %16, %cst_39 {dimension_numbers = #tpu.dot_dimension_numbers<[1], [0], [0], [1], [0, 0, 1, 1], [], []>} : vector<2x32xbf16>, vector<32x32xbf16>, vector<2x32xf32> -> vector<2x32xf32>
    %cst_40 = arith.constant dense<0.000000e+00> : vector<2x32xf32>
    %83 = tpu.matmul %81, %17, %cst_40 {dimension_numbers = #tpu.dot_dimension_numbers<[1], [0], [0], [1], [0, 0, 1, 1], [], []>} : vector<2x32xbf16>, vector<32x32xbf16>, vector<2x32xf32> -> vector<2x32xf32>
    %cst_41 = arith.constant dense<0.000000e+00> : vector<2x32xf32>
    %84 = tpu.matmul %81, %18, %cst_41 {dimension_numbers = #tpu.dot_dimension_numbers<[1], [0], [0], [1], [0, 0, 1, 1], [], []>} : vector<2x32xbf16>, vector<32x32xbf16>, vector<2x32xf32> -> vector<2x32xf32>
    %85 = vector.broadcast %19 : vector<1x32xf32> to vector<2x32xf32>
    %86 = arith.addf %84, %85 : vector<2x32xf32>
    %87 = vector.extract_strided_slice %5 {offsets = [4, 0], sizes = [2, 32], strides = [1, 1]} : vector<16x32xf32> to vector<2x32xf32>
    %88 = arith.addf %87, %82 : vector<2x32xf32>
    %89 = arith.negf %88 : vector<2x32xf32>
    %90 = math.exp %89 : vector<2x32xf32>
    %cst_42 = arith.constant 1.000000e+00 : f32
    %91 = vector.broadcast %cst_42 : f32 to vector<2x32xf32>
    %92 = arith.addf %91, %90 : vector<2x32xf32>
    %93 = arith.divf %91, %92 : vector<2x32xf32>
    %94 = vector.extract_strided_slice %10 {offsets = [4, 0], sizes = [2, 32], strides = [1, 1]} : vector<16x32xf32> to vector<2x32xf32>
    %95 = arith.addf %94, %83 : vector<2x32xf32>
    %96 = arith.negf %95 : vector<2x32xf32>
    %97 = math.exp %96 : vector<2x32xf32>
    %cst_43 = arith.constant 1.000000e+00 : f32
    %98 = vector.broadcast %cst_43 : f32 to vector<2x32xf32>
    %99 = arith.addf %98, %97 : vector<2x32xf32>
    %100 = arith.divf %98, %99 : vector<2x32xf32>
    %101 = vector.extract_strided_slice %15 {offsets = [4, 0], sizes = [2, 32], strides = [1, 1]} : vector<16x32xf32> to vector<2x32xf32>
    %102 = arith.mulf %93, %86 : vector<2x32xf32>
    %103 = arith.addf %101, %102 : vector<2x32xf32>
    %104 = math.tanh %103 : vector<2x32xf32>
    %cst_44 = arith.constant 1.000000e+00 : f32
    %105 = vector.broadcast %cst_44 : f32 to vector<2x32xf32>
    %106 = arith.subf %105, %100 : vector<2x32xf32>
    %107 = arith.mulf %106, %104 : vector<2x32xf32>
    %108 = arith.mulf %100, %79 : vector<2x32xf32>
    %109 = arith.addf %107, %108 : vector<2x32xf32>
    %c4 = arith.constant 4 : index
    %c0_45 = arith.constant 0 : index
    %110 = vector.load %arg20[%c4, %c0_45] : memref<16x32xf32, #tpu.memory_space<vmem>>, vector<2x32xf32>
    tpu.vector_store %arg20[%c4, %c0_45], %109 {strides = array<i32>} : memref<16x32xf32, #tpu.memory_space<vmem>>, vector<2x32xf32>,
    %111 = arith.truncf %109 : vector<2x32xf32> to vector<2x32xbf16>
    %cst_46 = arith.constant dense<0.000000e+00> : vector<2x32xf32>
    %112 = tpu.matmul %111, %16, %cst_46 {dimension_numbers = #tpu.dot_dimension_numbers<[1], [0], [0], [1], [0, 0, 1, 1], [], []>} : vector<2x32xbf16>, vector<32x32xbf16>, vector<2x32xf32> -> vector<2x32xf32>
    %cst_47 = arith.constant dense<0.000000e+00> : vector<2x32xf32>
    %113 = tpu.matmul %111, %17, %cst_47 {dimension_numbers = #tpu.dot_dimension_numbers<[1], [0], [0], [1], [0, 0, 1, 1], [], []>} : vector<2x32xbf16>, vector<32x32xbf16>, vector<2x32xf32> -> vector<2x32xf32>
    %cst_48 = arith.constant dense<0.000000e+00> : vector<2x32xf32>
    %114 = tpu.matmul %111, %18, %cst_48 {dimension_numbers = #tpu.dot_dimension_numbers<[1], [0], [0], [1], [0, 0, 1, 1], [], []>} : vector<2x32xbf16>, vector<32x32xbf16>, vector<2x32xf32> -> vector<2x32xf32>
    %115 = vector.broadcast %19 : vector<1x32xf32> to vector<2x32xf32>
    %116 = arith.addf %114, %115 : vector<2x32xf32>
    %117 = vector.extract_strided_slice %5 {offsets = [6, 0], sizes = [2, 32], strides = [1, 1]} : vector<16x32xf32> to vector<2x32xf32>
    %118 = arith.addf %117, %112 : vector<2x32xf32>
    %119 = arith.negf %118 : vector<2x32xf32>
    %120 = math.exp %119 : vector<2x32xf32>
    %cst_49 = arith.constant 1.000000e+00 : f32
    %121 = vector.broadcast %cst_49 : f32 to vector<2x32xf32>
    %122 = arith.addf %121, %120 : vector<2x32xf32>
    %123 = arith.divf %121, %122 : vector<2x32xf32>
    %124 = vector.extract_strided_slice %10 {offsets = [6, 0], sizes = [2, 32], strides = [1, 1]} : vector<16x32xf32> to vector<2x32xf32>
    %125 = arith.addf %124, %113 : vector<2x32xf32>
    %126 = arith.negf %125 : vector<2x32xf32>
    %127 = math.exp %126 : vector<2x32xf32>
    %cst_50 = arith.constant 1.000000e+00 : f32
    %128 = vector.broadcast %cst_50 : f32 to vector<2x32xf32>
    %129 = arith.addf %128, %127 : vector<2x32xf32>
    %130 = arith.divf %128, %129 : vector<2x32xf32>
    %131 = vector.extract_strided_slice %15 {offsets = [6, 0], sizes = [2, 32], strides = [1, 1]} : vector<16x32xf32> to vector<2x32xf32>
    %132 = arith.mulf %123, %116 : vector<2x32xf32>
    %133 = arith.addf %131, %132 : vector<2x32xf32>
    %134 = math.tanh %133 : vector<2x32xf32>
    %cst_51 = arith.constant 1.000000e+00 : f32
    %135 = vector.broadcast %cst_51 : f32 to vector<2x32xf32>
    %136 = arith.subf %135, %130 : vector<2x32xf32>
    %137 = arith.mulf %136, %134 : vector<2x32xf32>
    %138 = arith.mulf %130, %109 : vector<2x32xf32>
    %139 = arith.addf %137, %138 : vector<2x32xf32>
    %c6 = arith.constant 6 : index
    %c0_52 = arith.constant 0 : index
    %140 = vector.load %arg20[%c6, %c0_52] : memref<16x32xf32, #tpu.memory_space<vmem>>, vector<2x32xf32>
    tpu.vector_store %arg20[%c6, %c0_52], %139 {strides = array<i32>} : memref<16x32xf32, #tpu.memory_space<vmem>>, vector<2x32xf32>,
    %141 = arith.truncf %139 : vector<2x32xf32> to vector<2x32xbf16>
    %cst_53 = arith.constant dense<0.000000e+00> : vector<2x32xf32>
    %142 = tpu.matmul %141, %16, %cst_53 {dimension_numbers = #tpu.dot_dimension_numbers<[1], [0], [0], [1], [0, 0, 1, 1], [], []>} : vector<2x32xbf16>, vector<32x32xbf16>, vector<2x32xf32> -> vector<2x32xf32>
    %cst_54 = arith.constant dense<0.000000e+00> : vector<2x32xf32>
    %143 = tpu.matmul %141, %17, %cst_54 {dimension_numbers = #tpu.dot_dimension_numbers<[1], [0], [0], [1], [0, 0, 1, 1], [], []>} : vector<2x32xbf16>, vector<32x32xbf16>, vector<2x32xf32> -> vector<2x32xf32>
    %cst_55 = arith.constant dense<0.000000e+00> : vector<2x32xf32>
    %144 = tpu.matmul %141, %18, %cst_55 {dimension_numbers = #tpu.dot_dimension_numbers<[1], [0], [0], [1], [0, 0, 1, 1], [], []>} : vector<2x32xbf16>, vector<32x32xbf16>, vector<2x32xf32> -> vector<2x32xf32>
    %145 = vector.broadcast %19 : vector<1x32xf32> to vector<2x32xf32>
    %146 = arith.addf %144, %145 : vector<2x32xf32>
    %147 = vector.extract_strided_slice %5 {offsets = [8, 0], sizes = [2, 32], strides = [1, 1]} : vector<16x32xf32> to vector<2x32xf32>
    %148 = arith.addf %147, %142 : vector<2x32xf32>
    %149 = arith.negf %148 : vector<2x32xf32>
    %150 = math.exp %149 : vector<2x32xf32>
    %cst_56 = arith.constant 1.000000e+00 : f32
    %151 = vector.broadcast %cst_56 : f32 to vector<2x32xf32>
    %152 = arith.addf %151, %150 : vector<2x32xf32>
    %153 = arith.divf %151, %152 : vector<2x32xf32>
    %154 = vector.extract_strided_slice %10 {offsets = [8, 0], sizes = [2, 32], strides = [1, 1]} : vector<16x32xf32> to vector<2x32xf32>
    %155 = arith.addf %154, %143 : vector<2x32xf32>
    %156 = arith.negf %155 : vector<2x32xf32>
    %157 = math.exp %156 : vector<2x32xf32>
    %cst_57 = arith.constant 1.000000e+00 : f32
    %158 = vector.broadcast %cst_57 : f32 to vector<2x32xf32>
    %159 = arith.addf %158, %157 : vector<2x32xf32>
    %160 = arith.divf %158, %159 : vector<2x32xf32>
    %161 = vector.extract_strided_slice %15 {offsets = [8, 0], sizes = [2, 32], strides = [1, 1]} : vector<16x32xf32> to vector<2x32xf32>
    %162 = arith.mulf %153, %146 : vector<2x32xf32>
    %163 = arith.addf %161, %162 : vector<2x32xf32>
    %164 = math.tanh %163 : vector<2x32xf32>
    %cst_58 = arith.constant 1.000000e+00 : f32
    %165 = vector.broadcast %cst_58 : f32 to vector<2x32xf32>
    %166 = arith.subf %165, %160 : vector<2x32xf32>
    %167 = arith.mulf %166, %164 : vector<2x32xf32>
    %168 = arith.mulf %160, %139 : vector<2x32xf32>
    %169 = arith.addf %167, %168 : vector<2x32xf32>
    %c8 = arith.constant 8 : index
    %c0_59 = arith.constant 0 : index
    %170 = vector.load %arg20[%c8, %c0_59] : memref<16x32xf32, #tpu.memory_space<vmem>>, vector<2x32xf32>
    tpu.vector_store %arg20[%c8, %c0_59], %169 {strides = array<i32>} : memref<16x32xf32, #tpu.memory_space<vmem>>, vector<2x32xf32>,
    %171 = arith.truncf %169 : vector<2x32xf32> to vector<2x32xbf16>
    %cst_60 = arith.constant dense<0.000000e+00> : vector<2x32xf32>
    %172 = tpu.matmul %171, %16, %cst_60 {dimension_numbers = #tpu.dot_dimension_numbers<[1], [0], [0], [1], [0, 0, 1, 1], [], []>} : vector<2x32xbf16>, vector<32x32xbf16>, vector<2x32xf32> -> vector<2x32xf32>
    %cst_61 = arith.constant dense<0.000000e+00> : vector<2x32xf32>
    %173 = tpu.matmul %171, %17, %cst_61 {dimension_numbers = #tpu.dot_dimension_numbers<[1], [0], [0], [1], [0, 0, 1, 1], [], []>} : vector<2x32xbf16>, vector<32x32xbf16>, vector<2x32xf32> -> vector<2x32xf32>
    %cst_62 = arith.constant dense<0.000000e+00> : vector<2x32xf32>
    %174 = tpu.matmul %171, %18, %cst_62 {dimension_numbers = #tpu.dot_dimension_numbers<[1], [0], [0], [1], [0, 0, 1, 1], [], []>} : vector<2x32xbf16>, vector<32x32xbf16>, vector<2x32xf32> -> vector<2x32xf32>
    %175 = vector.broadcast %19 : vector<1x32xf32> to vector<2x32xf32>
    %176 = arith.addf %174, %175 : vector<2x32xf32>
    %177 = vector.extract_strided_slice %5 {offsets = [10, 0], sizes = [2, 32], strides = [1, 1]} : vector<16x32xf32> to vector<2x32xf32>
    %178 = arith.addf %177, %172 : vector<2x32xf32>
    %179 = arith.negf %178 : vector<2x32xf32>
    %180 = math.exp %179 : vector<2x32xf32>
    %cst_63 = arith.constant 1.000000e+00 : f32
    %181 = vector.broadcast %cst_63 : f32 to vector<2x32xf32>
    %182 = arith.addf %181, %180 : vector<2x32xf32>
    %183 = arith.divf %181, %182 : vector<2x32xf32>
    %184 = vector.extract_strided_slice %10 {offsets = [10, 0], sizes = [2, 32], strides = [1, 1]} : vector<16x32xf32> to vector<2x32xf32>
    %185 = arith.addf %184, %173 : vector<2x32xf32>
    %186 = arith.negf %185 : vector<2x32xf32>
    %187 = math.exp %186 : vector<2x32xf32>
    %cst_64 = arith.constant 1.000000e+00 : f32
    %188 = vector.broadcast %cst_64 : f32 to vector<2x32xf32>
    %189 = arith.addf %188, %187 : vector<2x32xf32>
    %190 = arith.divf %188, %189 : vector<2x32xf32>
    %191 = vector.extract_strided_slice %15 {offsets = [10, 0], sizes = [2, 32], strides = [1, 1]} : vector<16x32xf32> to vector<2x32xf32>
    %192 = arith.mulf %183, %176 : vector<2x32xf32>
    %193 = arith.addf %191, %192 : vector<2x32xf32>
    %194 = math.tanh %193 : vector<2x32xf32>
    %cst_65 = arith.constant 1.000000e+00 : f32
    %195 = vector.broadcast %cst_65 : f32 to vector<2x32xf32>
    %196 = arith.subf %195, %190 : vector<2x32xf32>
    %197 = arith.mulf %196, %194 : vector<2x32xf32>
    %198 = arith.mulf %190, %169 : vector<2x32xf32>
    %199 = arith.addf %197, %198 : vector<2x32xf32>
    %c10 = arith.constant 10 : index
    %c0_66 = arith.constant 0 : index
    %200 = vector.load %arg20[%c10, %c0_66] : memref<16x32xf32, #tpu.memory_space<vmem>>, vector<2x32xf32>
    tpu.vector_store %arg20[%c10, %c0_66], %199 {strides = array<i32>} : memref<16x32xf32, #tpu.memory_space<vmem>>, vector<2x32xf32>,
    %201 = arith.truncf %199 : vector<2x32xf32> to vector<2x32xbf16>
    %cst_67 = arith.constant dense<0.000000e+00> : vector<2x32xf32>
    %202 = tpu.matmul %201, %16, %cst_67 {dimension_numbers = #tpu.dot_dimension_numbers<[1], [0], [0], [1], [0, 0, 1, 1], [], []>} : vector<2x32xbf16>, vector<32x32xbf16>, vector<2x32xf32> -> vector<2x32xf32>
    %cst_68 = arith.constant dense<0.000000e+00> : vector<2x32xf32>
    %203 = tpu.matmul %201, %17, %cst_68 {dimension_numbers = #tpu.dot_dimension_numbers<[1], [0], [0], [1], [0, 0, 1, 1], [], []>} : vector<2x32xbf16>, vector<32x32xbf16>, vector<2x32xf32> -> vector<2x32xf32>
    %cst_69 = arith.constant dense<0.000000e+00> : vector<2x32xf32>
    %204 = tpu.matmul %201, %18, %cst_69 {dimension_numbers = #tpu.dot_dimension_numbers<[1], [0], [0], [1], [0, 0, 1, 1], [], []>} : vector<2x32xbf16>, vector<32x32xbf16>, vector<2x32xf32> -> vector<2x32xf32>
    %205 = vector.broadcast %19 : vector<1x32xf32> to vector<2x32xf32>
    %206 = arith.addf %204, %205 : vector<2x32xf32>
    %207 = vector.extract_strided_slice %5 {offsets = [12, 0], sizes = [2, 32], strides = [1, 1]} : vector<16x32xf32> to vector<2x32xf32>
    %208 = arith.addf %207, %202 : vector<2x32xf32>
    %209 = arith.negf %208 : vector<2x32xf32>
    %210 = math.exp %209 : vector<2x32xf32>
    %cst_70 = arith.constant 1.000000e+00 : f32
    %211 = vector.broadcast %cst_70 : f32 to vector<2x32xf32>
    %212 = arith.addf %211, %210 : vector<2x32xf32>
    %213 = arith.divf %211, %212 : vector<2x32xf32>
    %214 = vector.extract_strided_slice %10 {offsets = [12, 0], sizes = [2, 32], strides = [1, 1]} : vector<16x32xf32> to vector<2x32xf32>
    %215 = arith.addf %214, %203 : vector<2x32xf32>
    %216 = arith.negf %215 : vector<2x32xf32>
    %217 = math.exp %216 : vector<2x32xf32>
    %cst_71 = arith.constant 1.000000e+00 : f32
    %218 = vector.broadcast %cst_71 : f32 to vector<2x32xf32>
    %219 = arith.addf %218, %217 : vector<2x32xf32>
    %220 = arith.divf %218, %219 : vector<2x32xf32>
    %221 = vector.extract_strided_slice %15 {offsets = [12, 0], sizes = [2, 32], strides = [1, 1]} : vector<16x32xf32> to vector<2x32xf32>
    %222 = arith.mulf %213, %206 : vector<2x32xf32>
    %223 = arith.addf %221, %222 : vector<2x32xf32>
    %224 = math.tanh %223 : vector<2x32xf32>
    %cst_72 = arith.constant 1.000000e+00 : f32
    %225 = vector.broadcast %cst_72 : f32 to vector<2x32xf32>
    %226 = arith.subf %225, %220 : vector<2x32xf32>
    %227 = arith.mulf %226, %224 : vector<2x32xf32>
    %228 = arith.mulf %220, %199 : vector<2x32xf32>
    %229 = arith.addf %227, %228 : vector<2x32xf32>
    %c12 = arith.constant 12 : index
    %c0_73 = arith.constant 0 : index
    %230 = vector.load %arg20[%c12, %c0_73] : memref<16x32xf32, #tpu.memory_space<vmem>>, vector<2x32xf32>
    tpu.vector_store %arg20[%c12, %c0_73], %229 {strides = array<i32>} : memref<16x32xf32, #tpu.memory_space<vmem>>, vector<2x32xf32>,
    %231 = arith.truncf %229 : vector<2x32xf32> to vector<2x32xbf16>
    %cst_74 = arith.constant dense<0.000000e+00> : vector<2x32xf32>
    %232 = tpu.matmul %231, %16, %cst_74 {dimension_numbers = #tpu.dot_dimension_numbers<[1], [0], [0], [1], [0, 0, 1, 1], [], []>} : vector<2x32xbf16>, vector<32x32xbf16>, vector<2x32xf32> -> vector<2x32xf32>
    %cst_75 = arith.constant dense<0.000000e+00> : vector<2x32xf32>
    %233 = tpu.matmul %231, %17, %cst_75 {dimension_numbers = #tpu.dot_dimension_numbers<[1], [0], [0], [1], [0, 0, 1, 1], [], []>} : vector<2x32xbf16>, vector<32x32xbf16>, vector<2x32xf32> -> vector<2x32xf32>
    %cst_76 = arith.constant dense<0.000000e+00> : vector<2x32xf32>
    %234 = tpu.matmul %231, %18, %cst_76 {dimension_numbers = #tpu.dot_dimension_numbers<[1], [0], [0], [1], [0, 0, 1, 1], [], []>} : vector<2x32xbf16>, vector<32x32xbf16>, vector<2x32xf32> -> vector<2x32xf32>
    %235 = vector.broadcast %19 : vector<1x32xf32> to vector<2x32xf32>
    %236 = arith.addf %234, %235 : vector<2x32xf32>
    %237 = vector.extract_strided_slice %5 {offsets = [14, 0], sizes = [2, 32], strides = [1, 1]} : vector<16x32xf32> to vector<2x32xf32>
    %238 = arith.addf %237, %232 : vector<2x32xf32>
    %239 = arith.negf %238 : vector<2x32xf32>
    %240 = math.exp %239 : vector<2x32xf32>
    %cst_77 = arith.constant 1.000000e+00 : f32
    %241 = vector.broadcast %cst_77 : f32 to vector<2x32xf32>
    %242 = arith.addf %241, %240 : vector<2x32xf32>
    %243 = arith.divf %241, %242 : vector<2x32xf32>
    %244 = vector.extract_strided_slice %10 {offsets = [14, 0], sizes = [2, 32], strides = [1, 1]} : vector<16x32xf32> to vector<2x32xf32>
    %245 = arith.addf %244, %233 : vector<2x32xf32>
    %246 = arith.negf %245 : vector<2x32xf32>
    %247 = math.exp %246 : vector<2x32xf32>
    %cst_78 = arith.constant 1.000000e+00 : f32
    %248 = vector.broadcast %cst_78 : f32 to vector<2x32xf32>
    %249 = arith.addf %248, %247 : vector<2x32xf32>
    %250 = arith.divf %248, %249 : vector<2x32xf32>
    %251 = vector.extract_strided_slice %15 {offsets = [14, 0], sizes = [2, 32], strides = [1, 1]} : vector<16x32xf32> to vector<2x32xf32>
    %252 = arith.mulf %243, %236 : vector<2x32xf32>
    %253 = arith.addf %251, %252 : vector<2x32xf32>
    %254 = math.tanh %253 : vector<2x32xf32>
    %cst_79 = arith.constant 1.000000e+00 : f32
    %255 = vector.broadcast %cst_79 : f32 to vector<2x32xf32>
    %256 = arith.subf %255, %250 : vector<2x32xf32>
    %257 = arith.mulf %256, %254 : vector<2x32xf32>
    %258 = arith.mulf %250, %229 : vector<2x32xf32>
    %259 = arith.addf %257, %258 : vector<2x32xf32>
    %c14 = arith.constant 14 : index
    %c0_80 = arith.constant 0 : index
    %260 = vector.load %arg20[%c14, %c0_80] : memref<16x32xf32, #tpu.memory_space<vmem>>, vector<2x32xf32>
    tpu.vector_store %arg20[%c14, %c0_80], %259 {strides = array<i32>} : memref<16x32xf32, #tpu.memory_space<vmem>>, vector<2x32xf32>,
    %c0_81 = arith.constant 0 : index
    %c0_82 = arith.constant 0 : index
    %261 = vector.load %arg20[%c0_81, %c0_82] : memref<16x32xf32, #tpu.memory_space<vmem>>, vector<16x32xf32>
    %c0_83 = arith.constant 0 : index
    %c0_84 = arith.constant 0 : index
    %262 = vector.load %arg1[%c0_83, %c0_84] : memref<16x1xf32, #tpu.memory_space<vmem>>, vector<16x1xf32>
    %263 = vector.broadcast %262 : vector<16x1xf32> to vector<16x32xf32>
    %264 = arith.mulf %261, %263 : vector<16x32xf32>
    %c0_85 = arith.constant 0 : index
    %c0_86 = arith.constant 0 : index
    %265 = vector.load %arg2[%c0_85, %c0_86] : memref<16x64xbf16, #tpu.memory_space<vmem>>, vector<16x64xbf16>
    %c0_87 = arith.constant 0 : index
    %c0_88 = arith.constant 0 : index
    %266 = vector.load %arg13[%c0_87, %c0_88] : memref<64x128xbf16, #tpu.memory_space<vmem>>, vector<64x128xbf16>
    %cst_89 = arith.constant dense<0.000000e+00> : vector<16x128xf32>
    %267 = tpu.matmul %265, %266, %cst_89 {dimension_numbers = #tpu.dot_dimension_numbers<[1], [0], [0], [1], [0, 0, 1, 1], [], []>} : vector<16x64xbf16>, vector<64x128xbf16>, vector<16x128xf32> -> vector<16x128xf32>
    %c0_90 = arith.constant 0 : index
    %c0_91 = arith.constant 0 : index
    %268 = vector.load %arg14[%c0_90, %c0_91] : memref<1x128xf32, #tpu.memory_space<vmem>>, vector<1x128xf32>
    %269 = vector.broadcast %268 : vector<1x128xf32> to vector<16x128xf32>
    %270 = arith.addf %267, %269 : vector<16x128xf32>
    %271 = arith.truncf %264 : vector<16x32xf32> to vector<16x32xbf16>
    %c0_92 = arith.constant 0 : index
    %c0_93 = arith.constant 0 : index
    %272 = vector.load %arg15[%c0_92, %c0_93] : memref<32x128xbf16, #tpu.memory_space<vmem>>, vector<32x128xbf16>
    %cst_94 = arith.constant dense<0.000000e+00> : vector<16x128xf32>
    %273 = tpu.matmul %271, %272, %cst_94 {dimension_numbers = #tpu.dot_dimension_numbers<[1], [0], [0], [1], [0, 0, 1, 1], [], []>} : vector<16x32xbf16>, vector<32x128xbf16>, vector<16x128xf32> -> vector<16x128xf32>
    %c0_95 = arith.constant 0 : index
    %c0_96 = arith.constant 0 : index
    %274 = vector.load %arg16[%c0_95, %c0_96] : memref<1x128xf32, #tpu.memory_space<vmem>>, vector<1x128xf32>
    %275 = vector.broadcast %274 : vector<1x128xf32> to vector<16x128xf32>
    %276 = arith.addf %273, %275 : vector<16x128xf32>
    %277 = arith.addf %270, %276 : vector<16x128xf32>
    %cst_97 = arith.constant 0.000000e+00 : f32
    %278 = vector.broadcast %cst_97 : f32 to vector<16x128xf32>
    %279 = arith.maximumf %277, %278 : vector<16x128xf32>
    %280 = arith.truncf %279 : vector<16x128xf32> to vector<16x128xbf16>
    %c0_98 = arith.constant 0 : index
    %c0_99 = arith.constant 0 : index
    %281 = vector.load %arg17[%c0_98, %c0_99] : memref<128x128xbf16, #tpu.memory_space<vmem>>, vector<128x128xbf16>
    %cst_100 = arith.constant dense<0.000000e+00> : vector<16x128xf32>
    %282 = tpu.matmul %280, %281, %cst_100 {dimension_numbers = #tpu.dot_dimension_numbers<[1], [0], [0], [1], [0, 0, 1, 1], [], []>} : vector<16x128xbf16>, vector<128x128xbf16>, vector<16x128xf32> -> vector<16x128xf32>
    %c0_101 = arith.constant 0 : index
    %c0_102 = arith.constant 0 : index
    %283 = vector.load %arg18[%c0_101, %c0_102] : memref<1x128xf32, #tpu.memory_space<vmem>>, vector<1x128xf32>
    %284 = vector.broadcast %283 : vector<1x128xf32> to vector<16x128xf32>
    %285 = arith.addf %282, %284 : vector<16x128xf32>
    %c0_103 = arith.constant 0 : index
    %c0_104 = arith.constant 0 : index
    %286 = vector.load %arg19[%c0_103, %c0_104] : memref<16x128xf32, #tpu.memory_space<vmem>>, vector<16x128xf32>
    tpu.vector_store %arg19[%c0_103, %c0_104], %285 {strides = array<i32>} : memref<16x128xf32, #tpu.memory_space<vmem>>, vector<16x128xf32>,
    return
  }
}

</mosaic_0001>

<bundles_post_ra>
// kernel: tpu_custom_call.1
= control target key start
LH: loop header
LB: loop body
LE: loop exit
PB: predicated region body
PF: predicated region fallthrough
CT: control target
= control target key end

     0   :  { %s3666_s0 = inlined_call_operand.hbm [shape: bf16[16,32], index: 0, kind: input, shape index: {}]   ;;  %s3667_s1 = inlined_call_operand.vmem [shape: f32[16,1], index: 1, kind: input, shape index: {}]   ;;  %s3668_s2 = inlined_call_operand.hbm [shape: bf16[16,64], index: 2, kind: input, shape index: {}]   ;;  %s3669_s3 = inlined_call_operand.vmem [shape: bf16[32,32], index: 3, kind: input, shape index: {}]   ;;  %s3670_s4 = inlined_call_operand.hbm [shape: bf16[32,32], index: 4, kind: input, shape index: {}]   ;;  %s3671_s5 = inlined_call_operand.hbm [shape: bf16[32,32], index: 5, kind: input, shape index: {}]   ;;  %s3672_s6 = inlined_call_operand.hbm [shape: bf16[32,32], index: 6, kind: input, shape index: {}]   ;;  %s3673_s7 = inlined_call_operand.hbm [shape: bf16[32,32], index: 7, kind: input, shape index: {}]   ;;  %s3674_s8 = inlined_call_operand.hbm [shape: bf16[32,32], index: 8, kind: input, shape index: {}]   ;;  %s3675_s9 = inlined_call_operand.vmem [shape: f32[1,32], index: 9, kind: input, shape index: {}]   ;;  %s3676_s10 = inlined_call_operand.hbm [shape: f32[1,32], index: 10, kind: input, shape index: {}]   ;;  %s3677_s11 = inlined_call_operand.hbm [shape: f32[1,32], index: 11, kind: input, shape index: {}]   ;;  %s3678_s12 = inlined_call_operand.hbm [shape: f32[1,32], index: 12, kind: input, shape index: {}]   ;;  %s3679_s13 = inlined_call_operand.hbm [shape: bf16[64,128], index: 13, kind: input, shape index: {}]   ;;  %s3680_s14 = inlined_call_operand.hbm [shape: f32[1,128], index: 14, kind: input, shape index: {}]   ;;  %s3681_s15 = inlined_call_operand.hbm [shape: bf16[32,128], index: 15, kind: input, shape index: {}]   ;;  %s3682_s16 = inlined_call_operand.hbm [shape: f32[1,128], index: 16, kind: input, shape index: {}]   ;;  %s3683_s17 = inlined_call_operand.vmem [shape: bf16[128,128], index: 17, kind: input, shape index: {}]   ;;  %s3684_s18 = inlined_call_operand.vmem [shape: f32[1,128], index: 18, kind: input, shape index: {}]   ;;  %s3685_s19 = inlined_call_operand.hbm [shape: f32[16,128], index: 19, kind: output, shape index: {}]  }
   0x1   :  { %3691 = sst [smem:[#allocation36_spill]] %s3666_s0 }
   0x2   :  { %3692 = sst [smem:[#allocation37_spill]] %s3667_s1 }
   0x3   :  { %3693 = sst [smem:[#allocation38_spill]] %s3668_s2 }
   0x4   :  { %3694 = sst [smem:[#allocation39_spill]] %s3669_s3 }
   0x5   :  { %3695 = sst [smem:[#allocation40_spill]] %s3685_s19 }
   0x6   :  { %24 = vsyncpa [#allocation4], 0 }
   0x7   :  { %25 = vsyncpa [#allocation7], 0 }
   0x8   :  { %26 = vsyncpa [#allocation10], 0 }
   0x9   :  { %27 = vsyncpa [#allocation13], 0 }
   0xa   :  { %28 = vsyncpa [#allocation16], 0 }
   0xb   :  { %29 = vsyncpa [#allocation19], 0 }
   0xc   :  { %30 = vsyncpa [#allocation22], 0 }
   0xd   :  { %31 = vsyncpa [#allocation25], 0 }
   0xe   :  { %32 = vsyncpa [#allocation5], 0  ;;  %s2994_s0 = smov [#allocation6]   ;;  %s2995_s20 = smov [#allocation9]  }
   0xf   :  { %s52_s30 = sshll.u32 %s2994_s0, 4  ;;  %s78_s21 = sshll.u32 %s2995_s20, 4  ;;  %s53_s30 = int_to_ptr.vmem [resolvable:$true] %s52_s30  ;;  %s3116_s21 = int_to_ptr.vmem [resolvable:$true] %s78_s21 }
  0x10   :  { %s3696_s2 = sld [smem:[#allocation38_spill]] }
  0x16   :  { %s2646_s23 = scalar_lea.hbm %s3696_s2, 128 }
  0x17   :  { %p2647_p0 = scmp.ne.s32.totalorder %s3696_s2, %s2646_s23  ;;  %p2650_p1 = scmp.lt.u32.totalorder %s2646_s23, %s3696_s2 }
  0x19   :  { %p2652_p2 = pnand %p2650_p1, %p2647_p0 }
  0x1b   :  { %2655 = shalt.err (!%p2652_p2)
}
  0x1c   :  { %s2656_s27 = scalar_lea.vmem %s53_s30, 128  ;;  %p2661_p4 = scmp.lt.s32.totalorder %s53_s30, %s53_s30 }
  0x1d   :  { %p2657_p3 = scmp.ne.s32.totalorder %s53_s30, %s2656_s27  ;;  %p2662_p5 = scmp.lt.s32.totalorder %s2656_s27, %s2656_s27 }
  0x1f   :  { %p2663_p6 = por %p2662_p5, %p2661_p4 }
  0x21   :  { %p2664_p7 = pnand %p2663_p6, %p2657_p3 }
  0x23   :  { %2667 = shalt.err (!%p2664_p7)
}
  0x24   :  { %s2996_s28 = smov 64   ;;  %s2997_s29 = smov 4  }
  0x25   :  { %58 = dma.hbm_to_vmem [thread:$0]  %s3696_s2, 128, %s53_s30, [#allocation7], %s2996_s28, %s2996_s28, %s2997_s29  }
  0x26   :  { %s2668_s23 = scalar_lea.hbm %s3671_s5, 256 }
  0x27   :  { %p2669_p8 = scmp.ne.s32.totalorder %s3671_s5, %s2668_s23  ;;  %p2672_p9 = scmp.lt.u32.totalorder %s2668_s23, %s3671_s5 }
  0x29   :  { %p2674_p10 = pnand %p2672_p9, %p2669_p8 }
  0x2b   :  { %2677 = shalt.err (!%p2674_p10)
}
  0x2c   :  { %s2678_s27 = scalar_lea.vmem %s3116_s21, 256  ;;  %p2683_p12 = scmp.lt.s32.totalorder %s3116_s21, %s3116_s21 }
  0x2d   :  { %p2679_p11 = scmp.ne.s32.totalorder %s3116_s21, %s2678_s27  ;;  %p2684_p13 = scmp.lt.s32.totalorder %s2678_s27, %s2678_s27 }
  0x2f   :  { %p2685_p0 = por %p2684_p13, %p2683_p12 }
  0x31   :  { %p2686_p1 = pnand %p2685_p0, %p2679_p11 }
  0x33   :  { %2689 = shalt.err (!%p2686_p1)
}
  0x34   :  { %84 = dma.hbm_to_vmem [thread:$0]  %s3671_s5, 256, %s3116_s21, [#allocation10], %s2996_s28, %s2996_s28, %s2997_s29  }
  0x35   :  { %s2998_s0 = smov [#allocation12]   ;;  %s2999_s1 = smov [#allocation15]  }
  0x36   :  { %s102_s20 = sshll.u32 %s2998_s0, 4  ;;  %s129_s22 = sshll.u32 %s2999_s1, 4  ;;  %s103_s20 = int_to_ptr.vmem [resolvable:$true] %s102_s20  ;;  %s130_s22 = int_to_ptr.vmem [resolvable:$true] %s129_s22 }
  0x37   :  { %s2690_s25 = scalar_lea.hbm %s3673_s7, 256 }
  0x38   :  { %p2691_p2 = scmp.ne.s32.totalorder %s3673_s7, %s2690_s25  ;;  %p2694_p3 = scmp.lt.u32.totalorder %s2690_s25, %s3673_s7 }
  0x3a   :  { %p2696_p4 = pnand %p2694_p3, %p2691_p2 }
  0x3c   :  { %2699 = shalt.err (!%p2696_p4)
}
  0x3d   :  { %s2700_s5 = scalar_lea.vmem %s103_s20, 256  ;;  %p2705_p6 = scmp.lt.s32.totalorder %s103_s20, %s103_s20 }
  0x3e   :  { %p2701_p5 = scmp.ne.s32.totalorder %s103_s20, %s2700_s5  ;;  %p2706_p7 = scmp.lt.s32.totalorder %s2700_s5, %s2700_s5 }
  0x40   :  { %p2707_p8 = por %p2706_p7, %p2705_p6 }
  0x42   :  { %p2708_p9 = pnand %p2707_p8, %p2701_p5 }
  0x44   :  { %2711 = shalt.err (!%p2708_p9)
}
  0x45   :  { %108 = dma.hbm_to_vmem [thread:$0]  %s3673_s7, 256, %s103_s20, [#allocation13], %s2996_s28, %s2996_s28, %s2997_s29  }
  0x46   :  { %s2712_s19 = scalar_lea.hbm %s3676_s10, 16 }
  0x47   :  { %p2713_p10 = scmp.ne.s32.totalorder %s3676_s10, %s2712_s19  ;;  %p2716_p11 = scmp.lt.u32.totalorder %s2712_s19, %s3676_s10 }
  0x49   :  { %p2718_p12 = pnand %p2716_p11, %p2713_p10 }
  0x4b   :  { %2721 = shalt.err (!%p2718_p12)
}
  0x4c   :  { %s2722_s3 = scalar_lea.vmem %s130_s22, 16  ;;  %s2726_s26 = scalar_lea.vmem %s130_s22, 32 }
  0x4d   :  { %p2723_p13 = scmp.ne.s32.totalorder %s130_s22, %s2722_s3  ;;  %p2727_p0 = scmp.lt.s32.totalorder %s130_s22, %s130_s22 }
  0x4e   :  { %p2728_p1 = scmp.lt.s32.totalorder %s2726_s26, %s2722_s3 }
  0x50   :  { %p2729_p2 = por %p2728_p1, %p2727_p0 }
  0x52   :  { %p2730_p3 = pnand %p2729_p2, %p2723_p13 }
  0x54   :  { %2733 = shalt.err (!%p2730_p3)
}
  0x55   :  { %132 = dma.hbm_to_vmem [thread:$0]  %s3676_s10, 16, %s130_s22, [#allocation16]  }
  0x56   :  { %s3000_s27 = smov [#allocation18]   ;;  %s3001_s21 = smov [#allocation21]  }
  0x57   :  { %s149_s5 = sshll.u32 %s3000_s27, 4  ;;  %s171_s30 = sshll.u32 %s3001_s21, 4  ;;  %s150_s5 = int_to_ptr.vmem [resolvable:$true] %s149_s5  ;;  %s172_s30 = int_to_ptr.vmem [resolvable:$true] %s171_s30 }
  0x58   :  { %s2734_s19 = scalar_lea.hbm %s3678_s12, 16 }
  0x59   :  { %p2735_p4 = scmp.ne.s32.totalorder %s3678_s12, %s2734_s19  ;;  %p2738_p5 = scmp.lt.u32.totalorder %s2734_s19, %s3678_s12 }
  0x5b   :  { %p2740_p6 = pnand %p2738_p5, %p2735_p4 }
  0x5d   :  { %2743 = shalt.err (!%p2740_p6)
}
  0x5e   :  { %s2744_s10 = scalar_lea.vmem %s150_s5, 16  ;;  %s2748_s22 = scalar_lea.vmem %s150_s5, 32 }
  0x5f   :  { %p2745_p7 = scmp.ne.s32.totalorder %s150_s5, %s2744_s10  ;;  %p2749_p8 = scmp.lt.s32.totalorder %s150_s5, %s150_s5 }
  0x60   :  { %p2750_p9 = scmp.lt.s32.totalorder %s2748_s22, %s2744_s10 }
  0x62   :  { %p2751_p10 = por %p2750_p9, %p2749_p8 }
  0x64   :  { %p2752_p11 = pnand %p2751_p10, %p2745_p7 }
  0x66   :  { %2755 = shalt.err (!%p2752_p11)
}
  0x67   :  { %152 = dma.hbm_to_vmem [thread:$0]  %s3678_s12, 16, %s150_s5, [#allocation19]  }
  0x68   :  { %s2756_s27 = scalar_lea.hbm %s3680_s14, 16 }
  0x69   :  { %p2757_p12 = scmp.ne.s32.totalorder %s3680_s14, %s2756_s27  ;;  %p2760_p13 = scmp.lt.u32.totalorder %s2756_s27, %s3680_s14 }
  0x6b   :  { %p2762_p0 = pnand %p2760_p13, %p2757_p12 }
  0x6d   :  { %2765 = shalt.err (!%p2762_p0)
}
  0x6e   :  { %s2766_s1 = scalar_lea.vmem %s172_s30, 16  ;;  %s2770_s23 = scalar_lea.vmem %s172_s30, 32 }
  0x6f   :  { %p2767_p1 = scmp.ne.s32.totalorder %s172_s30, %s2766_s1  ;;  %p2771_p2 = scmp.lt.s32.totalorder %s172_s30, %s172_s30 }
  0x70   :  { %p2772_p3 = scmp.lt.s32.totalorder %s2770_s23, %s2766_s1 }
  0x72   :  { %p2773_p4 = por %p2772_p3, %p2771_p2 }
  0x74   :  { %p2774_p5 = pnand %p2773_p4, %p2767_p1 }
  0x76   :  { %2777 = shalt.err (!%p2774_p5)
}
  0x77   :  { %174 = dma.hbm_to_vmem [thread:$0]  %s3680_s14, 16, %s172_s30, [#allocation22]  }
  0x78   :  { %s3002_s24 = smov [#allocation3]   ;;  %s3003_s10 = smov [#allocation8]  }
  0x79   :  { %s38_s25 = sshll.u32 %s3002_s24, 4  ;;  %s66_s22 = sshll.u32 %s3003_s10, 4  ;;  %s39_s25 = int_to_ptr.vmem [resolvable:$true] %s38_s25  ;;  %s3204_s22 = int_to_ptr.vmem [resolvable:$true] %s66_s22 }
  0x7a   :  { %s3697_s7 = sld [smem:[#allocation36_spill]] }
  0x80   :  { %s2778_s20 = scalar_lea.hbm %s3697_s7, 128 }
  0x81   :  { %p2779_p6 = scmp.ne.s32.totalorder %s3697_s7, %s2778_s20  ;;  %p2782_p7 = scmp.lt.u32.totalorder %s2778_s20, %s3697_s7 }
  0x83   :  { %p2784_p8 = pnand %p2782_p7, %p2779_p6 }
  0x85   :  { %2787 = shalt.err (!%p2784_p8)
}
  0x86   :  { %s2788_s14 = scalar_lea.vmem %s39_s25, 128  ;;  %p2793_p10 = scmp.lt.s32.totalorder %s39_s25, %s39_s25 }
  0x87   :  { %p2789_p9 = scmp.ne.s32.totalorder %s39_s25, %s2788_s14  ;;  %p2794_p11 = scmp.lt.s32.totalorder %s2788_s14, %s2788_s14 }
  0x89   :  { %p2795_p12 = por %p2794_p11, %p2793_p10 }
  0x8b   :  { %p2796_p13 = pnand %p2795_p12, %p2789_p9 }
  0x8d   :  { %2799 = shalt.err (!%p2796_p13)
}
  0x8e   :  { %44 = dma.hbm_to_vmem [thread:$0]  %s3697_s7, 128, %s39_s25, [#allocation4], %s2996_s28, %s2996_s28, %s2997_s29  }
  0x8f   :  { %s2800_s12 = scalar_lea.hbm %s3670_s4, 256 }
  0x90   :  { %p2801_p0 = scmp.ne.s32.totalorder %s3670_s4, %s2800_s12  ;;  %p2804_p1 = scmp.lt.u32.totalorder %s2800_s12, %s3670_s4 }
  0x92   :  { %p2806_p2 = pnand %p2804_p1, %p2801_p0 }
  0x94   :  { %2809 = shalt.err (!%p2806_p2)
}
  0x95   :  { %s2810_s26 = scalar_lea.vmem %s3204_s22, 256  ;;  %p2815_p4 = scmp.lt.s32.totalorder %s3204_s22, %s3204_s22 }
  0x96   :  { %p2811_p3 = scmp.ne.s32.totalorder %s3204_s22, %s2810_s26  ;;  %p2816_p5 = scmp.lt.s32.totalorder %s2810_s26, %s2810_s26 }
  0x98   :  { %p2817_p6 = por %p2816_p5, %p2815_p4 }
  0x9a   :  { %p2818_p7 = pnand %p2817_p6, %p2811_p3 }
  0x9c   :  { %2821 = shalt.err (!%p2818_p7)
}
  0x9d   :  { %72 = dma.hbm_to_vmem [thread:$0]  %s3670_s4, 256, %s3204_s22, [#allocation7], %s2996_s28, %s2996_s28, %s2997_s29  }
  0x9e   :  { %s3004_s20 = smov [#allocation11]   ;;  %s3005_s21 = smov [#allocation14]  }
  0x9f   :  { %s90_s27 = sshll.u32 %s3004_s20, 4  ;;  %s114_s2 = sshll.u32 %s3005_s21, 4  ;;  %s91_s27 = int_to_ptr.vmem [resolvable:$true] %s90_s27  ;;  %s3241_s2 = int_to_ptr.vmem [resolvable:$true] %s114_s2 }
  0xa0   :  { %s2822_s30 = scalar_lea.hbm %s3672_s6, 256 }
  0xa1   :  { %p2823_p8 = scmp.ne.s32.totalorder %s3672_s6, %s2822_s30  ;;  %p2826_p9 = scmp.lt.u32.totalorder %s2822_s30, %s3672_s6 }
  0xa3   :  { %p2828_p10 = pnand %p2826_p9, %p2823_p8 }
  0xa5   :  { %2831 = shalt.err (!%p2828_p10)
}
  0xa6   :  { %s2832_s4 = scalar_lea.vmem %s91_s27, 256  ;;  %p2837_p12 = scmp.lt.s32.totalorder %s91_s27, %s91_s27 }
  0xa7   :  { %p2833_p11 = scmp.ne.s32.totalorder %s91_s27, %s2832_s4  ;;  %p2838_p13 = scmp.lt.s32.totalorder %s2832_s4, %s2832_s4 }
  0xa9   :  { %p2839_p0 = por %p2838_p13, %p2837_p12 }
  0xab   :  { %p2840_p1 = pnand %p2839_p0, %p2833_p11 }
  0xad   :  { %2843 = shalt.err (!%p2840_p1)
}
  0xae   :  { %96 = dma.hbm_to_vmem [thread:$0]  %s3672_s6, 256, %s91_s27, [#allocation10], %s2996_s28, %s2996_s28, %s2997_s29  }
  0xaf   :  { %s2844_s3 = scalar_lea.hbm %s3674_s8, 256 }
  0xb0   :  { %p2845_p2 = scmp.ne.s32.totalorder %s3674_s8, %s2844_s3  ;;  %p2848_p3 = scmp.lt.u32.totalorder %s2844_s3, %s3674_s8 }
  0xb2   :  { %p2850_p4 = pnand %p2848_p3, %p2845_p2 }
  0xb4   :  { %2853 = shalt.err (!%p2850_p4)
}
  0xb5   :  { %s2854_s21 = scalar_lea.vmem %s3241_s2, 256  ;;  %p2859_p6 = scmp.lt.s32.totalorder %s3241_s2, %s3241_s2 }
  0xb6   :  { %p2855_p5 = scmp.ne.s32.totalorder %s3241_s2, %s2854_s21  ;;  %p2860_p7 = scmp.lt.s32.totalorder %s2854_s21, %s2854_s21 }
  0xb8   :  { %p2861_p8 = por %p2860_p7, %p2859_p6 }
  0xba   :  { %p2862_p9 = pnand %p2861_p8, %p2855_p5 }
  0xbc   :  { %2865 = shalt.err (!%p2862_p9)
}
  0xbd   :  { %120 = dma.hbm_to_vmem [thread:$0]  %s3674_s8, 256, %s3241_s2, [#allocation13], %s2996_s28, %s2996_s28, %s2997_s29  }
  0xbe   :  { %s3006_s0 = smov [#allocation17]   ;;  %s3007_s30 = smov [#allocation20]  }
  0xbf   :  { %s139_s14 = sshll.u32 %s3006_s0, 4  ;;  %s158_s19 = sshll.u32 %s3007_s30, 4  ;;  %s140_s14 = int_to_ptr.vmem [resolvable:$true] %s139_s14  ;;  %s3278_s19 = int_to_ptr.vmem [resolvable:$true] %s158_s19 }
  0xc0   :  { %s2866_s12 = scalar_lea.hbm %s3677_s11, 16 }
  0xc1   :  { %p2867_p10 = scmp.ne.s32.totalorder %s3677_s11, %s2866_s12  ;;  %p2870_p11 = scmp.lt.u32.totalorder %s2866_s12, %s3677_s11 }
  0xc3   :  { %p2872_p12 = pnand %p2870_p11, %p2867_p10 }
  0xc5   :  { %2875 = shalt.err (!%p2872_p12)
}
  0xc6   :  { %s2876_s8 = scalar_lea.vmem %s140_s14, 16  ;;  %s2880_s2 = scalar_lea.vmem %s140_s14, 32 }
  0xc7   :  { %p2877_p13 = scmp.ne.s32.totalorder %s140_s14, %s2876_s8  ;;  %p2881_p0 = scmp.lt.s32.totalorder %s140_s14, %s140_s14 }
  0xc8   :  { %p2882_p1 = scmp.lt.s32.totalorder %s2880_s2, %s2876_s8 }
  0xca   :  { %p2883_p2 = por %p2882_p1, %p2881_p0 }
  0xcc   :  { %p2884_p3 = pnand %p2883_p2, %p2877_p13 }
  0xce   :  { %2887 = shalt.err (!%p2884_p3)
}
  0xcf   :  { %142 = dma.hbm_to_vmem [thread:$0]  %s3677_s11, 16, %s140_s14, [#allocation16]  }
  0xd0   :  { %s2888_s7 = scalar_lea.hbm %s3679_s13, 512 }
  0xd1   :  { %p2889_p4 = scmp.ne.s32.totalorder %s3679_s13, %s2888_s7  ;;  %p2892_p5 = scmp.lt.u32.totalorder %s2888_s7, %s3679_s13 }
  0xd3   :  { %p2894_p6 = pnand %p2892_p5, %p2889_p4 }
  0xd5   :  { %2897 = shalt.err (!%p2894_p6)
}
  0xd6   :  { %s2898_s0 = scalar_lea.vmem %s3278_s19, 512  ;;  %p2903_p8 = scmp.lt.s32.totalorder %s3278_s19, %s3278_s19 }
  0xd7   :  { %p2899_p7 = scmp.ne.s32.totalorder %s3278_s19, %s2898_s0  ;;  %p2904_p9 = scmp.lt.s32.totalorder %s2898_s0, %s2898_s0 }
  0xd9   :  { %p2905_p10 = por %p2904_p9, %p2903_p8 }
  0xdb   :  { %p2906_p11 = pnand %p2905_p10, %p2899_p7 }
  0xdd   :  { %2909 = shalt.err (!%p2906_p11)
}
  0xde   :  { %164 = dma.hbm_to_vmem [thread:$0]  %s3679_s13, 512, %s3278_s19, [#allocation19], %s2996_s28, %s2996_s28, %s2997_s29  }
  0xdf   :  { %s3008_s30 = smov [#allocation23]   ;;  %s3009_s23 = smov [#allocation24]  }
  0xe0   :  { %s180_s1 = sshll.u32 %s3008_s30, 4  ;;  %s193_s12 = sshll.u32 %s3009_s23, 4  ;;  %s181_s1 = int_to_ptr.vmem [resolvable:$true] %s180_s1  ;;  %s194_s12 = int_to_ptr.vmem [resolvable:$true] %s193_s12 }
  0xe1   :  { %s2910_s5 = scalar_lea.hbm %s3681_s15, 256 }
  0xe2   :  { %p2911_p12 = scmp.ne.s32.totalorder %s3681_s15, %s2910_s5  ;;  %p2914_p13 = scmp.lt.u32.totalorder %s2910_s5, %s3681_s15 }
  0xe4   :  { %p2916_p0 = pnand %p2914_p13, %p2911_p12 }
  0xe6   :  { %2919 = shalt.err (!%p2916_p0)
}
  0xe7   :  { %s2920_s13 = scalar_lea.vmem %s181_s1, 256  ;;  %p2925_p2 = scmp.lt.s32.totalorder %s181_s1, %s181_s1 }
  0xe8   :  { %p2921_p1 = scmp.ne.s32.totalorder %s181_s1, %s2920_s13  ;;  %p2926_p3 = scmp.lt.s32.totalorder %s2920_s13, %s2920_s13 }
  0xea   :  { %p2927_p4 = por %p2926_p3, %p2925_p2 }
  0xec   :  { %p2928_p5 = pnand %p2927_p4, %p2921_p1 }
  0xee   :  { %2931 = shalt.err (!%p2928_p5)
}
  0xef   :  { %186 = dma.hbm_to_vmem [thread:$0]  %s3681_s15, 256, %s181_s1, [#allocation22], %s2996_s28, %s2996_s28, %s2997_s29  }
  0xf0   :  { %s2932_s7 = scalar_lea.hbm %s3682_s16, 16 }
  0xf1   :  { %p2933_p6 = scmp.ne.s32.totalorder %s3682_s16, %s2932_s7  ;;  %p2936_p7 = scmp.lt.u32.totalorder %s2932_s7, %s3682_s16 }
  0xf3   :  { %p2938_p8 = pnand %p2936_p7, %p2933_p6 }
  0xf5   :  { %2941 = shalt.err (!%p2938_p8)
}
  0xf6   :  { %s2942_s0 = scalar_lea.vmem %s194_s12, 16  ;;  %s2946_s11 = scalar_lea.vmem %s194_s12, 32 }
  0xf7   :  { %p2943_p9 = scmp.ne.s32.totalorder %s194_s12, %s2942_s0  ;;  %p2947_p10 = scmp.lt.s32.totalorder %s194_s12, %s194_s12 }
  0xf8   :  { %p2948_p11 = scmp.lt.s32.totalorder %s2946_s11, %s2942_s0 }
  0xfa   :  { %p2949_p12 = por %p2948_p11, %p2947_p10 }
  0xfc   :  { %p2950_p13 = pnand %p2949_p12, %p2943_p9 }
  0xfe   :  { %2953 = shalt.err (!%p2950_p13)
}
  0xff   :  { %196 = dma.hbm_to_vmem [thread:$0]  %s3682_s16, 16, %s194_s12, [#allocation25]  }
 0x100   :  { %2976 = dma.done.wait [#allocation4], 128  }
 0x101   :  { %2977 = vsyncadd [#allocation4], 4294967168 }
 0x102   :  { %2978 = dma.done.wait [#allocation7], 384  }
 0x103   :  { %2979 = vsyncadd [#allocation7], 4294966912 }
 0x104   :  { %2980 = dma.done.wait [#allocation10], 512  }
 0x105   :  { %2981 = vsyncadd [#allocation10], 4294966784 }
 0x106   :  { %2982 = dma.done.wait [#allocation13], 512  }
 0x107   :  { %2983 = vsyncadd [#allocation13], 4294966784 }
 0x108   :  { %2984 = dma.done.wait [#allocation16], 32  }
 0x109   :  { %2985 = vsyncadd [#allocation16], 4294967264 }
 0x10a   :  { %2986 = dma.done.wait [#allocation19], 528  }
 0x10b   :  { %2987 = vsyncadd [#allocation19], 4294966768 }
 0x10c   :  { %2988 = dma.done.wait [#allocation22], 272  }
 0x10d   :  { %2989 = vsyncadd [#allocation22], 4294967024 }
 0x10e   :  { %2990 = dma.done.wait [#allocation25], 16  }
 0x10f   :  { %2991 = vsyncadd [#allocation25], 4294967280  ;;  %v3010_v0 = vmov 0.0   ;;  %vm3011_vm0 = vmmov 0   ;;  %v3012_v1 = vmov 0   ;;  %s3698_s14 = sld [smem:[#allocation39_spill]] }
 0x110   :  { %2251 = vmatprep.subr.bf16.mxu1 %v3010_v0  ;;  %2267 = vmatprep.subr.bf16.mxu0 %v3010_v0  ;;  %v2539_v3 = vld [vmem:[#allocation9] sm:$0xff]   ;;  %v2542_v5 = vld [vmem:[#allocation9 + $0x8] sm:$0xff]   ;;  %vm274_vm1 = vcmask 261120   ;;  %v2543_v7 = vld [vmem:[#allocation8] sm:$0xff]   ;;  %vm646_vm2 = vcmask 254976   ;;  %vm805_vm3 = vcmask 257026  }
 0x111   :  { %2255 = vmatprep.mubr.msk.bf16.mxu1 %vm3011_vm0, %v3010_v0  ;;  %2271 = vmatprep.mubr.msk.bf16.mxu0 %vm3011_vm0, %v3010_v0  ;;  %v2541_v6 = vld [vmem:[#allocation3] sm:$0xff]   ;;  %v2545_v9 = vld [vmem:[#allocation8 + $0x8] sm:$0xff]   ;;  %v3361_v10 = vld [vmem:[#allocation12 + $0x8] sm:$0xff]   ;;  %s3699_s22 = sld [smem:[#allocation37_spill]]  ;;  %vm966_vm4 = vcmask 259076   ;;  %vm1127_vm5 = vcmask 261126  }
 0x112   :  { %2537 = vset.pattern.permute.xlu0 %v3012_v1  ;;  %2268 = vmatpush3.bf16.msra.mxu0 %v2539_v3  ;;  %v3354_v8 = vld [vmem:[#allocation12] sm:$0xff]   ;;  %v3366_v11 = vld [vmem:[#allocation11] sm:$0xff]   ;;  %v3372_v12 = vld [vmem:[#allocation11 + $0x8] sm:$0xff]   ;;  %vm1820_vm6 = vcmask 523264  }
 0x113   :  { %2269 = vmatprep.subr.bf16.mxu0 %v3010_v0  ;;  %v3380_v13 = vld [vmem:[#allocation14] sm:$0xff]   ;;  %v3391_v14 = vld [vmem:[#allocation14 + $0x8] sm:$0xff]   ;;  %v2085_v17 = vld [vmem:[#allocation17] ss:$0 sm:$0xff] }
 0x114   :  { %v2076_v19 = vld [vmem:[%s3675_s9] ss:$0 sm:$0xff]  ;;  %v2081_v30 = vld [vmem:[#allocation15] ss:$0 sm:$0xff]  ;;  %v3419_v54 = vld [vmem:[#allocation18] ss:$0 sm:$0xff] }
 0x115   :  { %v2538_v2 = vld [vmem:[%s3698_s14] sm:$0xff]   ;;  %v2540_v4 = vld [vmem:[%s3698_s14 + $0x8] sm:$0xff]  }
 0x116   :  { %2252 = vmatpush3.bf16.msra.mxu1 %v2538_v2  ;;  %2270 = vmatpush3.bf16.msra.mxu0 %v2542_v5 }
 0x117   :  { %2253 = vmatprep.subr.bf16.mxu1 %v3010_v0  ;;  %2283 = vmatprep.subr.bf16.mxu0 %v3010_v0 }
 0x119   :  { %2272 = vmatmul.mubr.msk.bf16.vlgmr.msra.gmra.mrb[0].mxu0 %vm274_vm1, %v2541_v6 }
 0x11a   :  { %2254 = vmatpush3.bf16.msra.mxu1 %v2540_v4  ;;  %2284 = vmatpush3.bf16.msra.mxu0 %v3354_v8 }
 0x11b   :  { %2259 = vmatprep.subr.bf16.mxu1 %v3010_v0  ;;  %2285 = vmatprep.subr.bf16.mxu0 %v3010_v0 }
 0x11c   :  { %2287 = vmatprep.mubr.msk.bf16.mxu0 %vm3011_vm0, %v3010_v0 }
 0x11d   :  { %2256 = vmatmul.mubr.msk.bf16.vlgmr.msra.gmra.mrb[0].mxu1 %vm274_vm1, %v2541_v6 }
 0x11e   :  { %2260 = vmatpush3.bf16.msra.mxu1 %v2543_v7  ;;  %2263 = vmatprep.mubr.msk.bf16.mxu1 %vm3011_vm0, %v3010_v0 }
 0x11f   :  { %2261 = vmatprep.subr.bf16.mxu1 %v3010_v0  ;;  %2286 = vmatpush3.bf16.msra.mxu0 %v3361_v10 }
 0x120   :  { %2299 = vmatprep.subr.bf16.mxu0 %v3010_v0 }
 0x122   :  { %2262 = vmatpush3.bf16.msra.mxu1 %v2545_v9  ;;  %2288 = vmatmul.mubr.bf16.vlgmr.msra.gmra.mrb[4].mxu0 %v3012_v1 }
 0x123   :  { %2275 = vmatprep.subr.bf16.mxu1 %v3010_v0  ;;  %2300 = vmatpush3.bf16.msra.mxu0 %v3366_v11 }
 0x124   :  { %2303 = vmatprep.mubr.msk.bf16.mxu0 %vm3011_vm0, %v3010_v0  ;;  %2301 = vmatprep.subr.bf16.mxu0 %v3010_v0 }
 0x125   :  { %2264 = vmatmul.mubr.msk.bf16.vlgmr.msra.gmra.mrb[4].mxu1 %vm274_vm1, %v2541_v6 }
 0x126   :  { %2276 = vmatpush3.bf16.msra.mxu1 %v3366_v11  ;;  %2279 = vmatprep.mubr.msk.bf16.mxu1 %vm3011_vm0, %v3010_v0 }
 0x127   :  { %2277 = vmatprep.subr.bf16.mxu1 %v3010_v0  ;;  %2302 = vmatpush3.bf16.msra.mxu0 %v3372_v12 }
 0x128   :  { %2315 = vmatprep.subr.bf16.mxu0 %v3010_v0 }
 0x12a   :  { %2278 = vmatpush3.bf16.msra.mxu1 %v3372_v12 }
 0x12b   :  { %2291 = vmatprep.subr.bf16.mxu1 %v3010_v0 }
 0x12d   :  { %2280 = vmatmul.mubr.bf16.vlgmr.msra.gmra.mrb[8].mxu1 %v3012_v1 }
 0x12e   :  { %2292 = vmatpush3.bf16.msra.mxu1 %v3380_v13  ;;  %2295 = vmatprep.mubr.msk.bf16.mxu1 %vm3011_vm0, %v3010_v0 }
 0x12f   :  { %2293 = vmatprep.subr.bf16.mxu1 %v3010_v0 }
 0x132   :  { %2294 = vmatpush3.bf16.msra.mxu1 %v3391_v14 }
 0x133   :  { %2307 = vmatprep.subr.bf16.mxu1 %v3010_v0 }
 0x135   :  { %2296 = vmatmul.mubr.bf16.vlgmr.msra.gmra.mrb[12].mxu1 %v3012_v1 }
 0x136   :  { %2308 = vmatpush3.bf16.msra.mxu1 %v3354_v8  ;;  %2311 = vmatprep.mubr.msk.bf16.mxu1 %vm3011_vm0, %v3010_v0 }
 0x137   :  { %2309 = vmatprep.subr.bf16.mxu1 %v3010_v0 }
 0x13a   :  { %2310 = vmatpush3.bf16.msra.mxu1 %v3361_v10 }
 0x13b   :  { %2323 = vmatprep.subr.bf16.mxu1 %v3010_v0 }
 0x1ec   :  { %v440_v18 = vpop.f32.mrb[0].mxu0 }
 0x1ed   :  { %v2273_v21 = vpop.f32.mrb[1].mxu0  ;;  %v3422_v58 = vadd.f32 %v2085_v17, %v440_v18 }
 0x1ee   :  { %v443_v24 = vpop.f32.mrb[2].mxu0 }
 0x1ef   :  { %v3409_v25 = vadd.f32 %v2085_v17, %v443_v24  ;;  %v2274_v26 = vpop.f32.mrb[3].mxu0 }
 0x1f0   :  { %v312_v15 = vpop.f32.mrb[0].mxu1 }
 0x1f1   :  { %v2257_v16 = vpop.f32.mrb[1].mxu1  ;;  %v3413_v37 = vadd.f32 %v2076_v19, %v312_v15 }
 0x1f2   :  { %v315_v20 = vpop.f32.mrb[2].mxu1 }
 0x1f3   :  { %v3407_v22 = vadd.f32 %v2076_v19, %v315_v20  ;;  %v2258_v23 = vpop.f32.mrb[3].mxu1 }
 0x1f5   :  { %v561_v29 = vpop.f32.mrb[4].mxu0 }
 0x1f6   :  { %v2289_v32 = vpop.f32.mrb[5].mxu0 }
 0x1f7   :  { %v564_v35 = vpop.f32.mrb[6].mxu0 }
 0x1f8   :  { %v376_v27 = vpop.f32.mrb[4].mxu1  ;;  %v2290_v36 = vpop.f32.mrb[7].mxu0 }
 0x1f9   :  { %v2265_v28 = vpop.f32.mrb[5].mxu1  ;;  %v3415_v38 = vadd.f32 %v2081_v30, %v376_v27 }
 0x1fa   :  { %v379_v31 = vpop.f32.mrb[6].mxu1 }
 0x1fb   :  { %v3411_v33 = vadd.f32 %v2081_v30, %v379_v31  ;;  %v2266_v34 = vpop.f32.mrb[7].mxu1  ;;  %v632_v45 = vadd.f32 %v561_v29, %v3415_v38 }
 0x1fd   :  { %v2097_v46 = vmul.f32 -1.442695, %v632_v45 }
 0x200   :  { %v509_v39 = vpop.f32.mrb[8].mxu1 }
 0x201   :  { %v625_v40 = vadd.f32 %v509_v39, %v3413_v37  ;;  %v2281_v41 = vpop.f32.mrb[9].mxu1 }
 0x202   :  { %v512_v42 = vpop.f32.mrb[10].mxu1 }
 0x203   :  { %v2096_v43 = vmul.f32 -1.442695, %v625_v40  ;;  %v2282_v44 = vpop.f32.mrb[11].mxu1 }
 0x205   :  { %2566 = vpow2.f32 %v2096_v43 }
 0x206   :  { %2568 = vpow2.f32 %v2097_v46 }
 0x208   :  { %v619_v47 = vpop.f32.mrb[12].mxu1 }
 0x209   :  { %v2297_v48 = vpop.f32.mrb[13].mxu1  ;;  %v620_v56 = vadd.f32 %v3419_v54, %v619_v47 }
 0x20a   :  { %v622_v49 = vpop.f32.mrb[14].mxu1 }
 0x20b   :  { %v2298_v50 = vpop.f32.mrb[15].mxu1 }
 0x20f   :  { %v2567_v51 = vpop.eup %2566 }
 0x210   :  { %v629_v52 = vadd.f32 1.0, %v2567_v51  ;;  %v2569_v53 = vpop.eup %2568 }
 0x211   :  { %v636_v55 = vadd.f32 1.0, %v2569_v53 }
 0x212   :  { %2570 = vrcp.f32 %v629_v52  ;;  %v1760_v52 = vld [vmem:[%s3699_s22] sm:$0xff] }
 0x213   :  { %2572 = vrcp.f32 %v636_v55  ;;  %1764 = vperm.xlu0 %2537, %v1760_v52  }
 0x21c   :  { %v2571_v57 = vpop.eup %2570 }
 0x21d   :  { %v639_v59 = vmul.f32 %v2571_v57, %v620_v56  ;;  %v2573_v61 = vpop.eup %2572 }
 0x21e   :  { %v642_v62 = vsub.f32 1.0, %v2573_v61  ;;  %v644_v1 = vmul.f32 0.0, %v2573_v61 }
 0x21f   :  { %v640_v60 = vadd.f32 %v639_v59, %v3422_v58 }
 0x221   :  { %2574 = vtanh.f32 %v640_v60 }
 0x22b   :  { %v2575_v63 = vpop.eup %2574 }
 0x22c   :  { %v643_v2 = vmul.f32 %v2575_v63, %v642_v62 }
 0x22e   :  { %v645_v3 = vadd.f32 %v644_v1, %v643_v2 }
 0x230   :  { %647 = vst.msk [vmem:[#allocation2] sm:$0x3] %vm646_vm2, %v645_v3  ;;  %v648_v4 = vpack.c.bf16 %v645_v3, %v645_v3  ;;  %v801_v41 = vrot.slane %v645_v3, 6 }
 0x232   :  { %2304 = vmatmul.mubr.msk.bf16.vlgmr.msra.gmra.mrb[8].mxu0 %vm274_vm1, %v648_v4  ;;  %2312 = vmatmul.mubr.msk.bf16.vlgmr.msra.gmra.mrb[16].mxu1 %vm274_vm1, %v648_v4 }
 0x233   :  { %2316 = vmatpush3.bf16.msra.mxu0 %v3380_v13  ;;  %2319 = vmatprep.mubr.msk.bf16.mxu0 %vm3011_vm0, %v3010_v0 }
 0x234   :  { %2317 = vmatprep.subr.bf16.mxu0 %v3010_v0  ;;  %2324 = vmatpush3.bf16.msra.mxu1 %v3366_v11 }
 0x235   :  { %2325 = vmatprep.subr.bf16.mxu1 %v3010_v0  ;;  %2327 = vmatprep.mubr.msk.bf16.mxu1 %vm3011_vm0, %v3010_v0 }
 0x237   :  { %2318 = vmatpush3.bf16.msra.mxu0 %v3391_v14 }
 0x238   :  { %2331 = vmatprep.subr.bf16.mxu0 %v3010_v0  ;;  %2326 = vmatpush3.bf16.msra.mxu1 %v3372_v12 }
 0x239   :  { %2339 = vmatprep.subr.bf16.mxu1 %v3010_v0 }
 0x23a   :  { %2320 = vmatmul.mubr.msk.bf16.vlgmr.msra.gmra.mrb[12].mxu0 %vm274_vm1, %v648_v4 }
 0x23b   :  { %2332 = vmatpush3.bf16.msra.mxu0 %v3354_v8  ;;  %2335 = vmatprep.mubr.msk.bf16.mxu0 %vm3011_vm0, %v3010_v0 }
 0x23c   :  { %2333 = vmatprep.subr.bf16.mxu0 %v3010_v0 }
 0x23f   :  { %2334 = vmatpush3.bf16.msra.mxu0 %v3361_v10 }
 0x240   :  { %2347 = vmatprep.subr.bf16.mxu0 %v3010_v0 }
 0x305   :  { %v686_v5 = vpop.f32.mrb[8].mxu0  ;;  %v726_v6 = vpop.f32.mrb[16].mxu1 }
 0x306   :  { %v773_v7 = vrot.slane %v686_v5, 6  ;;  %v783_v9 = vrot.slane %v726_v6, 6  ;;  %v2305_v15 = vpop.f32.mrb[9].mxu0  ;;  %v2313_v16 = vpop.f32.mrb[17].mxu1 }
 0x307   :  { %v689_v17 = vpop.f32.mrb[10].mxu0  ;;  %v729_v18 = vpop.f32.mrb[18].mxu1 }
 0x308   :  { %v775_v19 = vadd.f32 %v773_v7, %v3413_v37  ;;  %v785_v20 = vadd.f32 %v783_v9, %v3415_v38  ;;  %v2306_v21 = vpop.f32.mrb[11].mxu0  ;;  %v2314_v23 = vpop.f32.mrb[19].mxu1 }
 0x30a   :  { %v2101_v24 = vmul.f32 -1.442695, %v775_v19  ;;  %v2102_v26 = vmul.f32 -1.442695, %v785_v20 }
 0x30c   :  { %2576 = vpow2.f32 %v2101_v24 }
 0x30d   :  { %2578 = vpow2.f32 %v2102_v26  ;;  %v766_v27 = vpop.f32.mrb[12].mxu0 }
 0x30e   :  { %v2321_v28 = vpop.f32.mrb[13].mxu0  ;;  %v767_v36 = vadd.f32 %v3419_v54, %v766_v27 }
 0x30f   :  { %v769_v29 = vpop.f32.mrb[14].mxu0 }
 0x310   :  { %v2322_v30 = vpop.f32.mrb[15].mxu0  ;;  %v793_v39 = vrot.slane %v767_v36, 6 }
 0x316   :  { %v2577_v31 = vpop.eup %2576 }
 0x317   :  { %v2579_v32 = vpop.eup %2578  ;;  %v779_v34 = vadd.f32 1.0, %v2577_v31 }
 0x318   :  { %v789_v35 = vadd.f32 1.0, %v2579_v32 }
 0x319   :  { %2580 = vrcp.f32 %v779_v34 }
 0x31a   :  { %2582 = vrcp.f32 %v789_v35 }
 0x323   :  { %v2581_v40 = vpop.eup %2580 }
 0x324   :  { %v2583_v42 = vpop.eup %2582  ;;  %v795_v43 = vmul.f32 %v2581_v40, %v793_v39 }
 0x325   :  { %v803_v44 = vmul.f32 %v2583_v42, %v801_v41  ;;  %v798_v46 = vsub.f32 1.0, %v2583_v42 }
 0x326   :  { %v796_v45 = vadd.f32 %v795_v43, %v3422_v58 }
 0x328   :  { %2584 = vtanh.f32 %v796_v45 }
 0x332   :  { %v2585_v47 = vpop.eup %2584 }
 0x333   :  { %v799_v48 = vmul.f32 %v2585_v47, %v798_v46 }
 0x335   :  { %v804_v49 = vadd.f32 %v803_v44, %v799_v48 }
 0x337   :  { %806 = vst.msk [vmem:[#allocation2] sm:$0xc] %vm805_vm3, %v804_v49  ;;  %v807_v50 = vpack.c.bf16 %v804_v49, %v804_v49  ;;  %v962_v24 = vrot.slane %v804_v49, 6 }
 0x339   :  { %v809_v51 = vrot.slane %v807_v50, 1 }
 0x33b   :  { %2328 = vmatmul.mubr.msk.bf16.vlgmr.msra.gmra.mrb[20].mxu1 %vm274_vm1, %v809_v51  ;;  %2336 = vmatmul.mubr.msk.bf16.vlgmr.msra.gmra.mrb[16].mxu0 %vm274_vm1, %v809_v51 }
 0x33c   :  { %2340 = vmatpush3.bf16.msra.mxu1 %v3380_v13  ;;  %2343 = vmatprep.mubr.msk.bf16.mxu1 %vm3011_vm0, %v3010_v0 }
 0x33d   :  { %2341 = vmatprep.subr.bf16.mxu1 %v3010_v0  ;;  %2348 = vmatpush3.bf16.msra.mxu0 %v3366_v11 }
 0x33e   :  { %2349 = vmatprep.subr.bf16.mxu0 %v3010_v0  ;;  %2351 = vmatprep.mubr.msk.bf16.mxu0 %vm3011_vm0, %v3010_v0 }
 0x340   :  { %2342 = vmatpush3.bf16.msra.mxu1 %v3391_v14 }
 0x341   :  { %2355 = vmatprep.subr.bf16.mxu1 %v3010_v0  ;;  %2350 = vmatpush3.bf16.msra.mxu0 %v3372_v12 }
 0x342   :  { %2363 = vmatprep.subr.bf16.mxu0 %v3010_v0 }
 0x343   :  { %2344 = vmatmul.mubr.msk.bf16.vlgmr.msra.gmra.mrb[24].mxu1 %vm274_vm1, %v809_v51 }
 0x344   :  { %2356 = vmatpush3.bf16.msra.mxu1 %v3354_v8  ;;  %2359 = vmatprep.mubr.msk.bf16.mxu1 %vm3011_vm0, %v3010_v0 }
 0x345   :  { %2357 = vmatprep.subr.bf16.mxu1 %v3010_v0 }
 0x348   :  { %2358 = vmatpush3.bf16.msra.mxu1 %v3361_v10 }
 0x349   :  { %2371 = vmatprep.subr.bf16.mxu1 %v3010_v0 }
 0x40e   :  { %v847_v53 = vpop.f32.mrb[20].mxu1  ;;  %v887_v55 = vpop.f32.mrb[16].mxu0 }
 0x40f   :  { %v934_v56 = vrot.slane %v847_v53, 4  ;;  %v944_v57 = vrot.slane %v887_v55, 4  ;;  %v2329_v59 = vpop.f32.mrb[21].mxu1  ;;  %v2337_v60 = vpop.f32.mrb[17].mxu0 }
 0x410   :  { %v850_v61 = vpop.f32.mrb[22].mxu1  ;;  %v890_v62 = vpop.f32.mrb[18].mxu0 }
 0x411   :  { %v936_v63 = vadd.f32 %v934_v56, %v3413_v37  ;;  %v946_v1 = vadd.f32 %v944_v57, %v3415_v38  ;;  %v2330_v2 = vpop.f32.mrb[23].mxu1  ;;  %v2338_v3 = vpop.f32.mrb[19].mxu0 }
 0x413   :  { %v2106_v4 = vmul.f32 -1.442695, %v936_v63  ;;  %v2107_v5 = vmul.f32 -1.442695, %v946_v1 }
 0x415   :  { %2586 = vpow2.f32 %v2106_v4 }
 0x416   :  { %2588 = vpow2.f32 %v2107_v5  ;;  %v927_v6 = vpop.f32.mrb[24].mxu1 }
 0x417   :  { %v2345_v7 = vpop.f32.mrb[25].mxu1  ;;  %v928_v20 = vadd.f32 %v3419_v54, %v927_v6 }
 0x418   :  { %v930_v9 = vpop.f32.mrb[26].mxu1 }
 0x419   :  { %v2346_v15 = vpop.f32.mrb[27].mxu1  ;;  %v954_v21 = vrot.slane %v928_v20, 4 }
 0x41f   :  { %v2587_v16 = vpop.eup %2586 }
 0x420   :  { %v2589_v17 = vpop.eup %2588  ;;  %v940_v18 = vadd.f32 1.0, %v2587_v16 }
 0x421   :  { %v950_v19 = vadd.f32 1.0, %v2589_v17 }
 0x422   :  { %2590 = vrcp.f32 %v940_v18 }
 0x423   :  { %2592 = vrcp.f32 %v950_v19 }
 0x42c   :  { %v2591_v23 = vpop.eup %2590 }
 0x42d   :  { %v2593_v26 = vpop.eup %2592  ;;  %v956_v27 = vmul.f32 %v2591_v23, %v954_v21 }
 0x42e   :  { %v964_v28 = vmul.f32 %v2593_v26, %v962_v24  ;;  %v959_v30 = vsub.f32 1.0, %v2593_v26 }
 0x42f   :  { %v957_v29 = vadd.f32 %v956_v27, %v3422_v58 }
 0x431   :  { %2594 = vtanh.f32 %v957_v29 }
 0x43b   :  { %v2595_v31 = vpop.eup %2594 }
 0x43c   :  { %v960_v32 = vmul.f32 %v2595_v31, %v959_v30 }
 0x43e   :  { %v965_v34 = vadd.f32 %v964_v28, %v960_v32 }
 0x440   :  { %967 = vst.msk [vmem:[#allocation2] sm:$0x30] %vm966_vm4, %v965_v34  ;;  %v968_v35 = vpack.c.bf16 %v965_v34, %v965_v34  ;;  %v1123_v1 = vrot.slane %v965_v34, 6 }
 0x442   :  { %v970_v36 = vrot.slane %v968_v35, 2 }
 0x444   :  { %2352 = vmatmul.mubr.msk.bf16.vlgmr.msra.gmra.mrb[20].mxu0 %vm274_vm1, %v970_v36  ;;  %2360 = vmatmul.mubr.msk.bf16.vlgmr.msra.gmra.mrb[28].mxu1 %vm274_vm1, %v970_v36 }
 0x445   :  { %2364 = vmatpush3.bf16.msra.mxu0 %v3380_v13  ;;  %2367 = vmatprep.mubr.msk.bf16.mxu0 %vm3011_vm0, %v3010_v0 }
 0x446   :  { %2365 = vmatprep.subr.bf16.mxu0 %v3010_v0  ;;  %2372 = vmatpush3.bf16.msra.mxu1 %v3366_v11 }
 0x447   :  { %2373 = vmatprep.subr.bf16.mxu1 %v3010_v0  ;;  %2375 = vmatprep.mubr.msk.bf16.mxu1 %vm3011_vm0, %v3010_v0 }
 0x449   :  { %2366 = vmatpush3.bf16.msra.mxu0 %v3391_v14 }
 0x44a   :  { %2379 = vmatprep.subr.bf16.mxu0 %v3010_v0  ;;  %2374 = vmatpush3.bf16.msra.mxu1 %v3372_v12 }
 0x44b   :  { %2387 = vmatprep.subr.bf16.mxu1 %v3010_v0 }
 0x44c   :  { %2368 = vmatmul.mubr.msk.bf16.vlgmr.msra.gmra.mrb[24].mxu0 %vm274_vm1, %v970_v36 }
 0x44d   :  { %2380 = vmatpush3.bf16.msra.mxu0 %v3354_v8  ;;  %2383 = vmatprep.mubr.msk.bf16.mxu0 %vm3011_vm0, %v3010_v0 }
 0x44e   :  { %2381 = vmatprep.subr.bf16.mxu0 %v3010_v0 }
 0x451   :  { %2382 = vmatpush3.bf16.msra.mxu0 %v3361_v10 }
 0x452   :  { %2395 = vmatprep.subr.bf16.mxu0 %v3010_v0 }
 0x517   :  { %v1008_v39 = vpop.f32.mrb[20].mxu0  ;;  %v1048_v40 = vpop.f32.mrb[28].mxu1 }
 0x518   :  { %v1095_v41 = vrot.slane %v1008_v39, 2  ;;  %v1105_v42 = vrot.slane %v1048_v40, 2  ;;  %v2353_v43 = vpop.f32.mrb[21].mxu0  ;;  %v2361_v44 = vpop.f32.mrb[29].mxu1 }
 0x519   :  { %v1011_v45 = vpop.f32.mrb[22].mxu0  ;;  %v1051_v46 = vpop.f32.mrb[30].mxu1 }
 0x51a   :  { %v1097_v47 = vadd.f32 %v1095_v41, %v3413_v37  ;;  %v1107_v48 = vadd.f32 %v1105_v42, %v3415_v38  ;;  %v2354_v49 = vpop.f32.mrb[23].mxu0  ;;  %v2362_v50 = vpop.f32.mrb[31].mxu1 }
 0x51c   :  { %v2111_v51 = vmul.f32 -1.442695, %v1097_v47  ;;  %v2112_v52 = vmul.f32 -1.442695, %v1107_v48 }
 0x51e   :  { %2596 = vpow2.f32 %v2111_v51 }
 0x51f   :  { %2598 = vpow2.f32 %v2112_v52  ;;  %v1088_v53 = vpop.f32.mrb[24].mxu0 }
 0x520   :  { %v2369_v55 = vpop.f32.mrb[25].mxu0  ;;  %v1089_v37 = vadd.f32 %v3419_v54, %v1088_v53 }
 0x521   :  { %v1091_v56 = vpop.f32.mrb[26].mxu0 }
 0x522   :  { %v2370_v57 = vpop.f32.mrb[27].mxu0  ;;  %v1115_v63 = vrot.slane %v1089_v37, 2 }
 0x528   :  { %v2597_v59 = vpop.eup %2596 }
 0x529   :  { %v2599_v60 = vpop.eup %2598  ;;  %v1101_v61 = vadd.f32 1.0, %v2597_v59 }
 0x52a   :  { %v1111_v62 = vadd.f32 1.0, %v2599_v60 }
 0x52b   :  { %2600 = vrcp.f32 %v1101_v61 }
 0x52c   :  { %2602 = vrcp.f32 %v1111_v62 }
 0x535   :  { %v2601_v38 = vpop.eup %2600 }
 0x536   :  { %v2603_v2 = vpop.eup %2602  ;;  %v1117_v3 = vmul.f32 %v2601_v38, %v1115_v63 }
 0x537   :  { %v1125_v4 = vmul.f32 %v2603_v2, %v1123_v1  ;;  %v1120_v6 = vsub.f32 1.0, %v2603_v2 }
 0x538   :  { %v1118_v5 = vadd.f32 %v1117_v3, %v3422_v58 }
 0x53a   :  { %2604 = vtanh.f32 %v1118_v5 }
 0x544   :  { %v2605_v7 = vpop.eup %2604 }
 0x545   :  { %v1121_v9 = vmul.f32 %v2605_v7, %v1120_v6 }
 0x547   :  { %v1126_v15 = vadd.f32 %v1125_v4, %v1121_v9 }
 0x549   :  { %1128 = vst.msk [vmem:[#allocation2] sm:$0xc0] %vm1127_vm5, %v1126_v15  ;;  %v1129_v16 = vpack.c.bf16 %v1126_v15, %v1126_v15  ;;  %v1275_v44 = vrot.slane %v1126_v15, 6 }
 0x54b   :  { %v1131_v17 = vrot.slane %v1129_v16, 3 }
 0x54d   :  { %2376 = vmatmul.mubr.msk.bf16.vlgmr.msra.gmra.mrb[32].mxu1 %vm274_vm1, %v1131_v17  ;;  %2384 = vmatmul.mubr.msk.bf16.vlgmr.msra.gmra.mrb[28].mxu0 %vm274_vm1, %v1131_v17 }
 0x54e   :  { %2388 = vmatpush3.bf16.msra.mxu1 %v3380_v13  ;;  %2391 = vmatprep.mubr.msk.bf16.mxu1 %vm3011_vm0, %v3010_v0 }
 0x54f   :  { %2389 = vmatprep.subr.bf16.mxu1 %v3010_v0  ;;  %2396 = vmatpush3.bf16.msra.mxu0 %v3366_v11 }
 0x550   :  { %2397 = vmatprep.subr.bf16.mxu0 %v3010_v0  ;;  %2399 = vmatprep.mubr.msk.bf16.mxu0 %vm3011_vm0, %v3010_v0 }
 0x552   :  { %2390 = vmatpush3.bf16.msra.mxu1 %v3391_v14 }
 0x553   :  { %2403 = vmatprep.subr.bf16.mxu1 %v3010_v0  ;;  %2398 = vmatpush3.bf16.msra.mxu0 %v3372_v12 }
 0x554   :  { %2411 = vmatprep.subr.bf16.mxu0 %v3010_v0 }
 0x555   :  { %2392 = vmatmul.mubr.msk.bf16.vlgmr.msra.gmra.mrb[36].mxu1 %vm274_vm1, %v1131_v17 }
 0x556   :  { %2404 = vmatpush3.bf16.msra.mxu1 %v3354_v8  ;;  %2407 = vmatprep.mubr.msk.bf16.mxu1 %vm3011_vm0, %v3010_v0 }
 0x557   :  { %2405 = vmatprep.subr.bf16.mxu1 %v3010_v0 }
 0x55a   :  { %2406 = vmatpush3.bf16.msra.mxu1 %v3361_v10 }
 0x55b   :  { %2419 = vmatprep.subr.bf16.mxu1 %v3010_v0 }
 0x620   :  { %v1169_v58 = vpop.f32.mrb[32].mxu1  ;;  %v1209_v18 = vpop.f32.mrb[28].mxu0 }
 0x621   :  { %v1255_v19 = vadd.f32 %v1169_v58, %v3407_v22  ;;  %v1262_v20 = vadd.f32 %v1209_v18, %v3411_v33  ;;  %v2377_v21 = vpop.f32.mrb[33].mxu1  ;;  %v2385_v23 = vpop.f32.mrb[29].mxu0 }
 0x622   :  { %v1172_v24 = vpop.f32.mrb[34].mxu1  ;;  %v1212_v26 = vpop.f32.mrb[30].mxu0 }
 0x623   :  { %v2116_v27 = vmul.f32 -1.442695, %v1255_v19  ;;  %v2117_v28 = vmul.f32 -1.442695, %v1262_v20  ;;  %v2378_v29 = vpop.f32.mrb[35].mxu1  ;;  %v2386_v30 = vpop.f32.mrb[31].mxu0 }
 0x625   :  { %2606 = vpow2.f32 %v2116_v27 }
 0x626   :  { %2608 = vpow2.f32 %v2117_v28 }
 0x628   :  { %v1249_v31 = vpop.f32.mrb[36].mxu1 }
 0x629   :  { %v2393_v32 = vpop.f32.mrb[37].mxu1  ;;  %v1250_v42 = vadd.f32 %v3419_v54, %v1249_v31 }
 0x62a   :  { %v1252_v34 = vpop.f32.mrb[38].mxu1 }
 0x62b   :  { %v2394_v35 = vpop.f32.mrb[39].mxu1 }
 0x62f   :  { %v2607_v36 = vpop.eup %2606 }
 0x630   :  { %v2609_v39 = vpop.eup %2608  ;;  %v1259_v40 = vadd.f32 1.0, %v2607_v36 }
 0x631   :  { %v1266_v41 = vadd.f32 1.0, %v2609_v39 }
 0x632   :  { %2610 = vrcp.f32 %v1259_v40 }
 0x633   :  { %2612 = vrcp.f32 %v1266_v41 }
 0x63c   :  { %v2611_v43 = vpop.eup %2610 }
 0x63d   :  { %v2613_v45 = vpop.eup %2612  ;;  %v1269_v46 = vmul.f32 %v2611_v43, %v1250_v42 }
 0x63e   :  { %v1277_v47 = vmul.f32 %v2613_v45, %v1275_v44  ;;  %v1272_v49 = vsub.f32 1.0, %v2613_v45 }
 0x63f   :  { %v1270_v48 = vadd.f32 %v1269_v46, %v3409_v25 }
 0x641   :  { %2614 = vtanh.f32 %v1270_v48 }
 0x64b   :  { %v2615_v50 = vpop.eup %2614 }
 0x64c   :  { %v1273_v51 = vmul.f32 %v2615_v50, %v1272_v49 }
 0x64e   :  { %v1278_v52 = vadd.f32 %v1277_v47, %v1273_v51 }
 0x650   :  { %1279 = vst.msk [vmem:[#allocation2 + $0x8] sm:$0x3] %vm646_vm2, %v1278_v52  ;;  %v1280_v53 = vpack.c.bf16 %v1278_v52, %v1278_v52  ;;  %v1433_v21 = vrot.slane %v1278_v52, 6 }
 0x652   :  { %2400 = vmatmul.mubr.msk.bf16.vlgmr.msra.gmra.mrb[32].mxu0 %vm274_vm1, %v1280_v53  ;;  %2408 = vmatmul.mubr.msk.bf16.vlgmr.msra.gmra.mrb[40].mxu1 %vm274_vm1, %v1280_v53 }
 0x653   :  { %2412 = vmatpush3.bf16.msra.mxu0 %v3380_v13  ;;  %2415 = vmatprep.mubr.msk.bf16.mxu0 %vm3011_vm0, %v3010_v0 }
 0x654   :  { %2413 = vmatprep.subr.bf16.mxu0 %v3010_v0  ;;  %2420 = vmatpush3.bf16.msra.mxu1 %v3366_v11 }
 0x655   :  { %2421 = vmatprep.subr.bf16.mxu1 %v3010_v0  ;;  %2423 = vmatprep.mubr.msk.bf16.mxu1 %vm3011_vm0, %v3010_v0 }
 0x657   :  { %2414 = vmatpush3.bf16.msra.mxu0 %v3391_v14 }
 0x658   :  { %2427 = vmatprep.subr.bf16.mxu0 %v3010_v0  ;;  %2422 = vmatpush3.bf16.msra.mxu1 %v3372_v12 }
 0x659   :  { %2435 = vmatprep.subr.bf16.mxu1 %v3010_v0 }
 0x65a   :  { %2416 = vmatmul.mubr.msk.bf16.vlgmr.msra.gmra.mrb[36].mxu0 %vm274_vm1, %v1280_v53 }
 0x65b   :  { %2428 = vmatpush3.bf16.msra.mxu0 %v3354_v8  ;;  %2431 = vmatprep.mubr.msk.bf16.mxu0 %vm3011_vm0, %v3010_v0 }
 0x65c   :  { %2429 = vmatprep.subr.bf16.mxu0 %v3010_v0 }
 0x65f   :  { %2430 = vmatpush3.bf16.msra.mxu0 %v3361_v10 }
 0x660   :  { %2443 = vmatprep.subr.bf16.mxu0 %v3010_v0 }
 0x725   :  { %v1318_v55 = vpop.f32.mrb[32].mxu0  ;;  %v1358_v56 = vpop.f32.mrb[40].mxu1 }
 0x726   :  { %v1405_v57 = vrot.slane %v1318_v55, 6  ;;  %v1415_v59 = vrot.slane %v1358_v56, 6  ;;  %v2401_v60 = vpop.f32.mrb[33].mxu0  ;;  %v2409_v61 = vpop.f32.mrb[41].mxu1 }
 0x727   :  { %v1321_v62 = vpop.f32.mrb[34].mxu0  ;;  %v1361_v37 = vpop.f32.mrb[42].mxu1 }
 0x728   :  { %v1407_v63 = vadd.f32 %v1405_v57, %v3407_v22  ;;  %v1417_v38 = vadd.f32 %v1415_v59, %v3411_v33  ;;  %v2402_v1 = vpop.f32.mrb[35].mxu0  ;;  %v2410_v2 = vpop.f32.mrb[43].mxu1 }
 0x72a   :  { %v2121_v3 = vmul.f32 -1.442695, %v1407_v63  ;;  %v2122_v4 = vmul.f32 -1.442695, %v1417_v38 }
 0x72c   :  { %2616 = vpow2.f32 %v2121_v3 }
 0x72d   :  { %2618 = vpow2.f32 %v2122_v4  ;;  %v1398_v5 = vpop.f32.mrb[36].mxu0 }
 0x72e   :  { %v2417_v6 = vpop.f32.mrb[37].mxu0  ;;  %v1399_v18 = vadd.f32 %v3419_v54, %v1398_v5 }
 0x72f   :  { %v1401_v7 = vpop.f32.mrb[38].mxu0 }
 0x730   :  { %v2418_v9 = vpop.f32.mrb[39].mxu0  ;;  %v1425_v19 = vrot.slane %v1399_v18, 6  ;;  %v2551_v7 = vld [vmem:[#allocation20] sm:$0xff]   ;;  %v2559_v18 = vld [vmem:[%s3683_s17 + $0x8] sm:$0xff]  }
 0x731   :  { %v2553_v9 = vld [vmem:[#allocation20 + $0x10] sm:$0xff]  }
 0x736   :  { %v2617_v15 = vpop.eup %2616 }
 0x737   :  { %v2619_v16 = vpop.eup %2618  ;;  %v1411_v17 = vadd.f32 1.0, %v2617_v15  ;;  %v2555_v15 = vld [vmem:[#allocation6] sm:$0xff]  }
 0x738   :  { %v1421_v58 = vadd.f32 1.0, %v2619_v16  ;;  %v2556_v16 = vld [vmem:[#allocation23] sm:$0xff]  }
 0x739   :  { %2620 = vrcp.f32 %v1411_v17  ;;  %v2557_v17 = vld [vmem:[#allocation23 + $0x8] sm:$0xff]  }
 0x73a   :  { %2622 = vrcp.f32 %v1421_v58  ;;  %v2558_v58 = vld [vmem:[%s3683_s17] sm:$0xff]  }
 0x743   :  { %v2621_v20 = vpop.eup %2620 }
 0x744   :  { %v2623_v23 = vpop.eup %2622  ;;  %v1427_v24 = vmul.f32 %v2621_v20, %v1425_v19  ;;  %v2560_v19 = vld [vmem:[%s3683_s17 + $0x10] sm:$0xff]   ;;  %v2561_v20 = vld [vmem:[%s3683_s17 + $0x18] sm:$0xff]  }
 0x745   :  { %v1435_v26 = vmul.f32 %v2623_v23, %v1433_v21  ;;  %v1430_v28 = vsub.f32 1.0, %v2623_v23  ;;  %v2562_v21 = vld [vmem:[%s3683_s17 + $0x20] sm:$0xff]   ;;  %v2563_v23 = vld [vmem:[%s3683_s17 + $0x28] sm:$0xff]  }
 0x746   :  { %v1428_v27 = vadd.f32 %v1427_v24, %v3409_v25 }
 0x748   :  { %2624 = vtanh.f32 %v1428_v27 }
 0x752   :  { %v2625_v29 = vpop.eup %2624 }
 0x753   :  { %v1431_v30 = vmul.f32 %v2625_v29, %v1430_v28 }
 0x755   :  { %v1436_v31 = vadd.f32 %v1435_v26, %v1431_v30 }
 0x757   :  { %1437 = vst.msk [vmem:[#allocation2 + $0x8] sm:$0xc] %vm805_vm3, %v1436_v31  ;;  %v1438_v32 = vpack.c.bf16 %v1436_v31, %v1436_v31  ;;  %v1593_v61 = vrot.slane %v1436_v31, 6 }
 0x759   :  { %v1440_v34 = vrot.slane %v1438_v32, 1 }
 0x75b   :  { %2424 = vmatmul.mubr.msk.bf16.vlgmr.msra.gmra.mrb[44].mxu1 %vm274_vm1, %v1440_v34  ;;  %2432 = vmatmul.mubr.msk.bf16.vlgmr.msra.gmra.mrb[40].mxu0 %vm274_vm1, %v1440_v34 }
 0x75c   :  { %2436 = vmatpush3.bf16.msra.mxu1 %v3380_v13  ;;  %2439 = vmatprep.mubr.msk.bf16.mxu1 %vm3011_vm0, %v3010_v0 }
 0x75d   :  { %2437 = vmatprep.subr.bf16.mxu1 %v3010_v0  ;;  %2444 = vmatpush3.bf16.msra.mxu0 %v3366_v11  ;;  %v1761_v11 = vld [vmem:[%s3699_s22 + $0x8] sm:$0xff] }
 0x75e   :  { %2445 = vmatprep.subr.bf16.mxu0 %v3010_v0  ;;  %2447 = vmatprep.mubr.msk.bf16.mxu0 %vm3011_vm0, %v3010_v0 }
 0x75f   :  { %1769 = vperm.xlu0 %2537, %v1761_v11  }
 0x760   :  { %2438 = vmatpush3.bf16.msra.mxu1 %v3391_v14 }
 0x761   :  { %2451 = vmatprep.subr.bf16.mxu1 %v3010_v0  ;;  %2446 = vmatpush3.bf16.msra.mxu0 %v3372_v12 }
 0x762   :  { %2459 = vmatprep.subr.bf16.mxu0 %v3010_v0 }
 0x763   :  { %2440 = vmatmul.mubr.msk.bf16.vlgmr.msra.gmra.mrb[48].mxu1 %vm274_vm1, %v1440_v34 }
 0x764   :  { %2452 = vmatpush3.bf16.msra.mxu1 %v3354_v8  ;;  %2455 = vmatprep.mubr.msk.bf16.mxu1 %vm3011_vm0, %v3010_v0 }
 0x765   :  { %2453 = vmatprep.subr.bf16.mxu1 %v3010_v0 }
 0x768   :  { %2454 = vmatpush3.bf16.msra.mxu1 %v3361_v10 }
 0x769   :  { %2467 = vmatprep.subr.bf16.mxu1 %v3010_v0 }
 0x82e   :  { %v1478_v12 = vpop.f32.mrb[44].mxu1  ;;  %v1518_v35 = vpop.f32.mrb[40].mxu0 }
 0x82f   :  { %v1565_v36 = vrot.slane %v1478_v12, 4  ;;  %v1575_v39 = vrot.slane %v1518_v35, 4  ;;  %v2425_v40 = vpop.f32.mrb[45].mxu1  ;;  %v2433_v8 = vpop.f32.mrb[41].mxu0 }
 0x830   :  { %v1481_v41 = vpop.f32.mrb[46].mxu1  ;;  %v1521_v42 = vpop.f32.mrb[42].mxu0 }
 0x831   :  { %v1567_v43 = vadd.f32 %v1565_v36, %v3407_v22  ;;  %v1577_v44 = vadd.f32 %v1575_v39, %v3411_v33  ;;  %v2426_v10 = vpop.f32.mrb[47].mxu1  ;;  %v2434_v45 = vpop.f32.mrb[43].mxu0 }
 0x833   :  { %v2126_v46 = vmul.f32 -1.442695, %v1567_v43  ;;  %v2127_v47 = vmul.f32 -1.442695, %v1577_v44 }
 0x835   :  { %2626 = vpow2.f32 %v2126_v46 }
 0x836   :  { %2628 = vpow2.f32 %v2127_v47  ;;  %v1558_v48 = vpop.f32.mrb[48].mxu1 }
 0x837   :  { %v2441_v49 = vpop.f32.mrb[49].mxu1  ;;  %v1559_v57 = vadd.f32 %v3419_v54, %v1558_v48 }
 0x838   :  { %v1561_v50 = vpop.f32.mrb[50].mxu1 }
 0x839   :  { %v2442_v51 = vpop.f32.mrb[51].mxu1  ;;  %v1585_v59 = vrot.slane %v1559_v57, 4  ;;  %v1765_v57 = vpop.permute.xlu0 %1764 }
 0x83f   :  { %v2627_v52 = vpop.eup %2626 }
 0x840   :  { %v2629_v53 = vpop.eup %2628  ;;  %v1571_v55 = vadd.f32 1.0, %v2627_v52 }
 0x841   :  { %v1581_v56 = vadd.f32 1.0, %v2629_v53 }
 0x842   :  { %2630 = vrcp.f32 %v1571_v55 }
 0x843   :  { %2632 = vrcp.f32 %v1581_v56 }
 0x84c   :  { %v2631_v60 = vpop.eup %2630 }
 0x84d   :  { %v2633_v62 = vpop.eup %2632  ;;  %v1587_v37 = vmul.f32 %v2631_v60, %v1585_v59  ;;  %v1758_v59 = vld [vmem:[#allocation2] sm:$0xff]  ;;  %v1770_v60 = vpop.permute.xlu0 %1769 }
 0x84e   :  { %v1595_v63 = vmul.f32 %v2633_v62, %v1593_v61  ;;  %v1590_v1 = vsub.f32 1.0, %v2633_v62  ;;  %v1772_v61 = vmul.f32 %v1765_v57, %v1758_v59 }
 0x84f   :  { %v1588_v38 = vadd.f32 %v1587_v37, %v3409_v25 }
 0x851   :  { %2634 = vtanh.f32 %v1588_v38  ;;  %v2133_v38 = vld [vmem:[#allocation21] ss:$0 sm:$0xff] }
 0x85b   :  { %v2635_v2 = vpop.eup %2634 }
 0x85c   :  { %v1591_v3 = vmul.f32 %v2635_v2, %v1590_v1  ;;  %v2140_v1 = vld [vmem:[#allocation24] ss:$0 sm:$0xff] }
 0x85d   :  { %v2507_v2 = vadd.f32 %v2140_v1, %v2133_v38 }
 0x85e   :  { %v3587_v4 = vadd.f32 %v1595_v63, %v1591_v3  ;;  %v2565_v63 = vld [vmem:[%s3683_s17 + $0x38] sm:$0xff]  }
 0x860   :  { %1597 = vst.msk [vmem:[#allocation2 + $0x8] sm:$0x30] %vm966_vm4, %v3587_v4  ;;  %v1598_v5 = vpack.c.bf16 %v3587_v4, %v3587_v4  ;;  %v1753_v47 = vrot.slane %v3587_v4, 6 }
 0x862   :  { %v1600_v6 = vrot.slane %v1598_v5, 2 }
 0x864   :  { %2448 = vmatmul.mubr.msk.bf16.vlgmr.msra.gmra.mrb[44].mxu0 %vm274_vm1, %v1600_v6  ;;  %2456 = vmatmul.mubr.msk.bf16.vlgmr.msra.gmra.mrb[52].mxu1 %vm274_vm1, %v1600_v6 }
 0x865   :  { %2460 = vmatpush3.bf16.msra.mxu0 %v3380_v13  ;;  %2463 = vmatprep.mubr.msk.bf16.mxu0 %vm3011_vm0, %v3010_v0  ;;  %v2552_v13 = vld [vmem:[#allocation20 + $0x8] sm:$0xff]  }
 0x866   :  { %2461 = vmatprep.subr.bf16.mxu0 %v3010_v0  ;;  %2475 = vmatprep.mubr.msk.bf16.mxu1 %vm3011_vm0, %v3010_v0 }
 0x867   :  { %2468 = vmatpush3.bf16.msra.mxu1 %v2551_v7 }
 0x868   :  { %2469 = vmatprep.subr.bf16.mxu1 %v3010_v0 }
 0x869   :  { %2462 = vmatpush3.bf16.msra.mxu0 %v3391_v14  ;;  %v2554_v14 = vld [vmem:[#allocation20 + $0x18] sm:$0xff]  }
 0x86a   :  { %2487 = vmatprep.subr.bf16.mxu0 %v3010_v0 }
 0x86b   :  { %2470 = vmatpush3.bf16.msra.mxu1 %v2552_v13 }
 0x86c   :  { %2464 = vmatmul.mubr.msk.bf16.vlgmr.msra.gmra.mrb[48].mxu0 %vm274_vm1, %v1600_v6  ;;  %2471 = vmatprep.subr.bf16.mxu1 %v3010_v0 }
 0x86d   :  { %2503 = vmatprep.mubr.msk.bf16.mxu0 %vm3011_vm0, %v3010_v0  ;;  %2488 = vmatpush3.bf16.msra.mxu0 %v2558_v58 }
 0x86e   :  { %2489 = vmatprep.subr.bf16.mxu0 %v3010_v0 }
 0x86f   :  { %2472 = vmatpush3.bf16.msra.mxu1 %v2553_v9 }
 0x870   :  { %2473 = vmatprep.subr.bf16.mxu1 %v3010_v0 }
 0x871   :  { %2490 = vmatpush3.bf16.msra.mxu0 %v2559_v18 }
 0x872   :  { %2491 = vmatprep.subr.bf16.mxu0 %v3010_v0 }
 0x873   :  { %2474 = vmatpush3.bf16.msra.mxu1 %v2554_v14 }
 0x874   :  { %2479 = vmatprep.subr.bf16.mxu1 %v3010_v0 }
 0x875   :  { %2492 = vmatpush3.bf16.msra.mxu0 %v2560_v19 }
 0x876   :  { %2476 = vmatmul.mubr.msk.bf16.vlgmr.msra.gmra.mrb[56].mxu1 %vm1820_vm6, %v2555_v15  ;;  %2493 = vmatprep.subr.bf16.mxu0 %v3010_v0 }
 0x877   :  { %2480 = vmatpush3.bf16.msra.mxu1 %v2556_v16  ;;  %2483 = vmatprep.mubr.msk.bf16.mxu1 %vm3011_vm0, %v3010_v0 }
 0x878   :  { %2481 = vmatprep.subr.bf16.mxu1 %v3010_v0 }
 0x879   :  { %2494 = vmatpush3.bf16.msra.mxu0 %v2561_v20 }
 0x87a   :  { %2495 = vmatprep.subr.bf16.mxu0 %v3010_v0 }
 0x87b   :  { %2482 = vmatpush3.bf16.msra.mxu1 %v2557_v17 }
 0x87d   :  { %2496 = vmatpush3.bf16.msra.mxu0 %v2562_v21 }
 0x87e   :  { %2497 = vmatprep.subr.bf16.mxu0 %v3010_v0 }
 0x881   :  { %2498 = vmatpush3.bf16.msra.mxu0 %v2563_v23 }
 0x882   :  { %2499 = vmatprep.subr.bf16.mxu0 %v3010_v0 }
 0x937   :  { %v1638_v24 = vpop.f32.mrb[44].mxu0  ;;  %v1678_v26 = vpop.f32.mrb[52].mxu1 }
 0x938   :  { %v1725_v27 = vrot.slane %v1638_v24, 2  ;;  %v1735_v28 = vrot.slane %v1678_v26, 2  ;;  %v2449_v29 = vpop.f32.mrb[45].mxu0  ;;  %v2457_v30 = vpop.f32.mrb[53].mxu1 }
 0x939   :  { %v1641_v31 = vpop.f32.mrb[46].mxu0  ;;  %v1681_v32 = vpop.f32.mrb[54].mxu1 }
 0x93a   :  { %v1727_v34 = vadd.f32 %v1725_v27, %v3407_v22  ;;  %v1737_v11 = vadd.f32 %v1735_v28, %v3411_v33  ;;  %v2450_v12 = vpop.f32.mrb[47].mxu0  ;;  %v2458_v35 = vpop.f32.mrb[55].mxu1 }
 0x93c   :  { %v2131_v36 = vmul.f32 -1.442695, %v1727_v34  ;;  %v2132_v39 = vmul.f32 -1.442695, %v1737_v11 }
 0x93e   :  { %2636 = vpow2.f32 %v2131_v36 }
 0x93f   :  { %2638 = vpow2.f32 %v2132_v39  ;;  %v1718_v40 = vpop.f32.mrb[48].mxu0 }
 0x940   :  { %v2465_v8 = vpop.f32.mrb[49].mxu0  ;;  %v1719_v22 = vadd.f32 %v3419_v54, %v1718_v40 }
 0x941   :  { %v1721_v41 = vpop.f32.mrb[50].mxu0 }
 0x942   :  { %v2466_v42 = vpop.f32.mrb[51].mxu0  ;;  %v1745_v46 = vrot.slane %v1719_v22, 2 }
 0x948   :  { %v2637_v43 = vpop.eup %2636 }
 0x949   :  { %v2639_v44 = vpop.eup %2638  ;;  %v1731_v10 = vadd.f32 1.0, %v2637_v43 }
 0x94a   :  { %v1741_v45 = vadd.f32 1.0, %v2639_v44 }
 0x94b   :  { %2640 = vrcp.f32 %v1731_v10 }
 0x94c   :  { %2642 = vrcp.f32 %v1741_v45 }
 0x955   :  { %v2641_v33 = vpop.eup %2640 }
 0x956   :  { %v2643_v48 = vpop.eup %2642  ;;  %v1747_v49 = vmul.f32 %v2641_v33, %v1745_v46 }
 0x957   :  { %v1755_v50 = vmul.f32 %v2643_v48, %v1753_v47  ;;  %v1750_v52 = vsub.f32 1.0, %v2643_v48 }
 0x958   :  { %v1748_v51 = vadd.f32 %v1747_v49, %v3409_v25  ;;  %v2564_v25 = vld [vmem:[%s3683_s17 + $0x30] sm:$0xff]   ;;  %s3013_s17 = smov [#allocation26]  }
 0x959   :  { %2500 = vmatpush3.bf16.msra.mxu0 %v2564_v25  ;;  %s2057_s29 = sshll.u32 %s3013_s17, 4  ;;  %s2058_s29 = int_to_ptr.vmem [resolvable:$true] %s2057_s29 }
 0x95a   :  { %2644 = vtanh.f32 %v1748_v51  ;;  %2501 = vmatprep.subr.bf16.mxu0 %v3010_v0  ;;  %v2144_v0 = vld [vmem:[%s3684_s18] ss:$0 sm:$0xff]  ;;  %s2954_s14 = scalar_lea.vmem %s2058_s29, 256  ;;  %p2959_p1 = scmp.lt.s32.totalorder %s2058_s29, %s2058_s29 }
 0x95b   :  { %p2955_p0 = scmp.ne.s32.totalorder %s2058_s29, %s2954_s14  ;;  %p2960_p2 = scmp.lt.s32.totalorder %s2954_s14, %s2954_s14 }
 0x95d   :  { %2502 = vmatpush3.bf16.msra.mxu0 %v2565_v63  ;;  %p2961_p3 = por %p2960_p2, %p2959_p1 }
 0x95f   :  { %p2962_p4 = pnand %p2961_p3, %p2955_p0 }
 0x964   :  { %v2645_v53 = vpop.eup %2644 }
 0x965   :  { %v1751_v55 = vmul.f32 %v2645_v53, %v1750_v52 }
 0x967   :  { %v1756_v56 = vadd.f32 %v1755_v50, %v1751_v55 }
 0x969   :  { %1757 = vst.msk [vmem:[#allocation2 + $0x8] sm:$0xc0] %vm1127_vm5, %v1756_v56 }
 0x970   :  { %v1759_v54 = vld [vmem:[#allocation2 + $0x8] sm:$0xff] }
 0x971   :  { %v1773_v62 = vmul.f32 %v1770_v60, %v1759_v54 }
 0x973   :  { %v1865_v37 = vpack.c.bf16 %v1773_v62, %v1772_v61 }
 0x975   :  { %2484 = vmatmul.mubr.msk.bf16.vlgmr.msra.gmra.mrb[56].mxu1 %vm274_vm1, %v1865_v37 }
 0xa48   :  { %v1926_v3 = vpop.f32.mrb[56].mxu1 }
 0xa49   :  { %v2508_v4 = vadd.f32 %v2507_v2, %v1926_v3  ;;  %v2485_v5 = vpop.f32.mrb[57].mxu1 }
 0xa4a   :  { %v1929_v6 = vpop.f32.mrb[58].mxu1 }
 0xa4b   :  { %v2510_v7 = vadd.f32 %v2507_v2, %v1929_v6  ;;  %v2486_v13 = vpop.f32.mrb[59].mxu1  ;;  %v1935_v9 = vmax.f32 %v2508_v4, 0.0 }
 0xa4d   :  { %v1936_v14 = vmax.f32 %v2510_v7, 0.0 }
 0xa4f   :  { %v1937_v15 = vpack.c.bf16 %v1936_v14, %v1935_v9 }
 0xa51   :  { %2504 = vmatmul.mubr.bf16.vlgmr.msra.gmra.mrb[52].mxu0 %v1937_v15 }
 0xb24   :  { %v2043_v16 = vpop.f32.mrb[52].mxu0 }
 0xb25   :  { %v2044_v17 = vadd.f32 %v2144_v0, %v2043_v16  ;;  %v2505_v58 = vpop.f32.mrb[53].mxu0 }
 0xb26   :  { %v2046_v18 = vpop.f32.mrb[54].mxu0 }
 0xb27   :  { %2050 = vst [vmem:[#allocation26] sm:$0xff] %v2044_v17  ;;  %v2047_v19 = vadd.f32 %v2144_v0, %v2046_v18  ;;  %v2506_v20 = vpop.f32.mrb[55].mxu0 }
 0xb29   :  { %2051 = vst [vmem:[#allocation26 + $0x8] sm:$0xff] %v2047_v19 }
 0xb2a   :  { %2965 = shalt.err (!%p2962_p4)
}
 0xb2b   :  { %s3700_s1 = sld [smem:[#allocation40_spill]] }
 0xb31   :  { %s2966_s23 = scalar_lea.hbm %s3700_s1, 256 }
 0xb32   :  { %p2967_p5 = scmp.ne.s32.totalorder %s3700_s1, %s2966_s23  ;;  %p2970_p6 = scmp.lt.u32.totalorder %s2966_s23, %s3700_s1 }
 0xb34   :  { %p2972_p7 = pnand %p2970_p6, %p2967_p5 }
 0xb36   :  { %2975 = shalt.err (!%p2972_p7)
}
 0xb37   :  { %s3014_s5 = smov 128   ;;  %s3015_s24 = smov 8  }
 0xb38   :  { %2063 = dma.vmem_to_hbm [thread:$0]  %s2058_s29, 256, %s3700_s1, [#allocation5], %s3014_s5, %s3014_s5, %s3015_s24  }
 0xb39   :  { %2992 = dma.done.wait [#allocation5], 256  }
 0xb3a   :  { %2993 = vsyncadd [#allocation5], 4294967040 }
 0xb3b   :  { %2067 = vsyncpa [#allocation4], 1 }
 0xb3c   :  { %2068 = vsyncpa [#allocation7], 1 }
 0xb3d   :  { %2069 = vsyncpa [#allocation10], 1 }
 0xb3e   :  { %2070 = vsyncpa [#allocation13], 1 }
 0xb3f   :  { %2071 = vsyncpa [#allocation16], 1 }
 0xb40   :  { %2072 = vsyncpa [#allocation19], 1 }
 0xb41   :  { %2073 = vsyncpa [#allocation22], 1 }
 0xb42   :  { %2074 = vsyncpa [#allocation25], 1 }
 0xb43   :  { %2075 = vsyncpa [#allocation5], 1 }

</bundles_post_ra>
